<compile_context>
chip_gen: v7x
topology: tpu7x:2x2x1
jax: 0.10.0
libtpu: 0.0.40
codegen_flags: <defaults>
</compile_context>

<pallas_src>
import functools

import jax
import jax.numpy as jnp
from jax.experimental import pallas as pl
from jax.experimental.pallas import tpu as pltpu


def _vmem_limit_bytes():
    # ~75% of physical per-core VMEM (v5e/v6e: 128 MiB -> 96 MiB, v7x: 64 -> 48),
    # leaving compiler scratch / semaphore headroom.
    try:
        cap = int(pltpu.get_tpu_info().vmem_capacity_bytes)
    except Exception:
        cap = 64 * 1024 * 1024
    return min((cap * 3) // 4, 96 * 1024 * 1024)


# ---------------------------------------------------------------------------
# Fused kernel: out = y1 + MLP(LN2(y1)),  y1 = x + MHSA(LN1(x))
# One batch element per grid step; all parameters resident in VMEM.
# ---------------------------------------------------------------------------
def _vit_block_kernel(x_ref, g1_ref, be1_ref, wqkv_ref, bqkv_ref,
                      g2_ref, be2_ref, w1_ref, b1_ref, w2_ref, b2_ref,
                      o_ref, *, n_heads, d_head, eps):
    f32 = jnp.float32
    x = x_ref[...].astype(f32)                                     # [S, D]

    # ---- LayerNorm1 (f32 math) ----
    mu = jnp.mean(x, axis=-1, keepdims=True)
    var = jnp.mean(jnp.square(x - mu), axis=-1, keepdims=True)
    xn = (x - mu) * jax.lax.rsqrt(var + eps)
    xn = xn * g1_ref[...].astype(f32) + be1_ref[...].astype(f32)

    cd = wqkv_ref.dtype                                            # matmul compute dtype
    scale = 1.0 / (float(d_head) ** 0.5)

    # ---- MHSA: static unrolled head loop, fused QKV matmul per head ----
    heads = []
    for h in range(n_heads):
        lo = h * d_head
        xh = xn[:, lo:lo + d_head].astype(cd)                      # [S, dh]
        qkv = jnp.dot(xh, wqkv_ref[h],                             # [S, 3*dh]
                      preferred_element_type=f32)
        qkv = qkv + bqkv_ref[h].astype(f32)
        q = qkv[:, :d_head] * scale                                # fold 1/sqrt(dh) into q
        k = qkv[:, d_head:2 * d_head]
        v = qkv[:, 2 * d_head:]

        # scores = (q/sqrt(dh)) @ k.T : contract over d_head, no transpose copy
        s = jax.lax.dot_general(q.astype(cd), k.astype(cd),
                                (((1,), (1,)), ((), ())),
                                preferred_element_type=f32)        # [S, S]
        s = s - jnp.max(s, axis=-1, keepdims=True)
        e = jnp.exp(s)
        p = e * pl.reciprocal(jnp.sum(e, axis=-1, keepdims=True), approx=True)

        heads.append(jnp.dot(p.astype(cd), v.astype(cd),
                             preferred_element_type=f32))          # [S, dh]

    y1 = x + jnp.concatenate(heads, axis=-1)                       # residual 1, [S, D]

    # ---- LayerNorm2 + MLP + residual 2 (weights resident, f32 acc) ----
    mu2 = jnp.mean(y1, axis=-1, keepdims=True)
    var2 = jnp.mean(jnp.square(y1 - mu2), axis=-1, keepdims=True)
    yn = (y1 - mu2) * jax.lax.rsqrt(var2 + eps)
    yn = yn * g2_ref[...].astype(f32) + be2_ref[...].astype(f32)

    hmid = jnp.dot(yn.astype(w1_ref.dtype), w1_ref[...],
                   preferred_element_type=f32) + b1_ref[...].astype(f32)
    hmid = jax.nn.gelu(hmid, approximate=True)                     # tanh-approx (see TODO)
    z = jnp.dot(hmid.astype(w2_ref.dtype), w2_ref[...],
                preferred_element_type=f32) + b2_ref[...].astype(f32)

    # single lane-dense store of the full [S, D] output tile
    o_ref[...] = (y1 + z).astype(o_ref.dtype)


def my_vit_block(x, p, *, n_heads, eps=1e-5, compute_dtype=jnp.bfloat16):
    B, S, D = x.shape
    assert D % n_heads == 0
    d_head = D // n_heads
    ff = p["w1"].shape[1]

    # Pack per-head Q/K/V weights -> one [H, dh, 3*dh] operand (one wider MXU
    # matmul per head). Weight matrices are cast to the compute dtype (bf16 by
    # default: bf16-native MXU + halved weight DMA/VMEM); biases/LN params stay f32.
    wqkv = jnp.concatenate([p["wq"], p["wk"], p["wv"]], axis=-1).astype(compute_dtype)
    bqkv = jnp.concatenate([p["bq"], p["bk"], p["bv"]], axis=-1).astype(jnp.float32)
    w1 = p["w1"].astype(compute_dtype)
    w2 = p["w2"].astype(compute_dtype)
    g1 = p["g1"].astype(jnp.float32)
    be1 = p["be1"].astype(jnp.float32)
    g2 = p["g2"].astype(jnp.float32)
    be2 = p["be2"].astype(jnp.float32)
    b1 = p["b1"].astype(jnp.float32)
    b2 = p["b2"].astype(jnp.float32)

    kernel = functools.partial(_vit_block_kernel,
                               n_heads=n_heads, d_head=d_head, eps=eps)

    def build(single_buffer_weights):
        pm = pl.Buffered(1) if single_buffer_weights else None

        def const_spec(shape):
            nd = len(shape)
            idx = lambda b, _n=nd: (0,) * _n
            if pm is None:
                return pl.BlockSpec(shape, idx)
            return pl.BlockSpec(shape, idx, pipeline_mode=pm)

        in_specs = [
            pl.BlockSpec((None, S, D), lambda b: (b, 0, 0)),       # x (batch squeezed)
            const_spec((1, D)),                                    # LN1 gamma
            const_spec((1, D)),                                    # LN1 beta
            const_spec((n_heads, d_head, 3 * d_head)),             # Wqkv (resident)
            const_spec((n_heads, 1, 3 * d_head)),                  # bqkv
            const_spec((1, D)),                                    # LN2 gamma
            const_spec((1, D)),                                    # LN2 beta
            const_spec((D, ff)),                                   # W1 (resident)
            const_spec((1, ff)),                                   # b1
            const_spec((ff, D)),                                   # W2 (resident)
            const_spec((1, D)),                                    # b2
        ]
        return pl.pallas_call(
            kernel,
            out_shape=jax.ShapeDtypeStruct((B, S, D), x.dtype),
            grid_spec=pltpu.PrefetchScalarGridSpec(
                num_scalar_prefetch=0,
                grid=(B,),
                in_specs=in_specs,
                out_specs=pl.BlockSpec((None, S, D), lambda b: (b, 0, 0)),
            ),
            compiler_params=pltpu.CompilerParams(
                dimension_semantics=("parallel",),
                vmem_limit_bytes=_vmem_limit_bytes(),
            ),
        )

    args = (x, g1, be1, wqkv, bqkv, g2, be2, w1, b1, w2, b2)
    try:
        return build(True)(*args)
    except Exception:
        # Fallback: some JAX builds may reject single-buffered pipeline_mode;
        # rerun with default (double) buffering for the resident operands.
        return build(False)(*args)


# ---------------------------------------------------------------------------
# Pure-JAX reference (mirrors MyViTBlock.forward; tanh-approx GELU, see TODO)
# ---------------------------------------------------------------------------
def my_vit_block_ref(x, p, *, n_heads, eps=1e-5):
    B, S, D = x.shape
    dh = D // n_heads

    def ln(v, g, b):
        mu = v.mean(-1, keepdims=True)
        var = ((v - mu) ** 2).mean(-1, keepdims=True)
        return (v - mu) / jnp.sqrt(var + eps) * g + b

    xn = ln(x, p["g1"], p["be1"])
    heads = []
    for h in range(n_heads):
        xh = xn[:, :, h * dh:(h + 1) * dh]
        q = xh @ p["wq"][h] + p["bq"][h]
        k = xh @ p["wk"][h] + p["bk"][h]
        v = xh @ p["wv"][h] + p["bv"][h]
        s = jnp.einsum("bqd,bkd->bqk", q, k) / (dh ** 0.5)
        a = jax.nn.softmax(s, axis=-1)
        heads.append(jnp.einsum("bqk,bkd->bqd", a, v))
    y1 = x + jnp.concatenate(heads, axis=-1)

    y1n = ln(y1, p["g2"], p["be2"])
    hmid = jax.nn.gelu(y1n @ p["w1"] + p["b1"], approximate=True)
    return y1 + (hmid @ p["w2"] + p["b2"])


if __name__ == "__main__":
    key = jax.random.PRNGKey(0)
    batch, seq, hidden, n_heads, mlp_ratio = 2, 8, 32, 2, 4
    d_head = hidden // n_heads
    ff = hidden * mlp_ratio

    ks = jax.random.split(key, 16)
    x = jax.random.normal(ks[0], (batch, seq, hidden), dtype=jnp.float32)

    p = {
        "g1":  1.0 + 0.1 * jax.random.normal(ks[1], (1, hidden), dtype=jnp.float32),
        "be1": 0.02 * jax.random.normal(ks[2], (1, hidden), dtype=jnp.float32),
        "wq":  0.05 * jax.random.normal(ks[3], (n_heads, d_head, d_head), dtype=jnp.float32),
        "bq":  0.02 * jax.random.normal(ks[4], (n_heads, 1, d_head), dtype=jnp.float32),
        "wk":  0.05 * jax.random.normal(ks[5], (n_heads, d_head, d_head), dtype=jnp.float32),
        "bk":  0.02 * jax.random.normal(ks[6], (n_heads, 1, d_head), dtype=jnp.float32),
        "wv":  0.05 * jax.random.normal(ks[7], (n_heads, d_head, d_head), dtype=jnp.float32),
        "bv":  0.02 * jax.random.normal(ks[8], (n_heads, 1, d_head), dtype=jnp.float32),
        "g2":  1.0 + 0.1 * jax.random.normal(ks[9], (1, hidden), dtype=jnp.float32),
        "be2": 0.02 * jax.random.normal(ks[10], (1, hidden), dtype=jnp.float32),
        "w1":  0.02 * jax.random.normal(ks[11], (hidden, ff), dtype=jnp.float32),
        "b1":  0.02 * jax.random.normal(ks[12], (1, ff), dtype=jnp.float32),
        "w2":  0.02 * jax.random.normal(ks[13], (ff, hidden), dtype=jnp.float32),
        "b2":  0.02 * jax.random.normal(ks[14], (1, hidden), dtype=jnp.float32),
    }

    ref = my_vit_block_ref(x, p, n_heads=n_heads)

    # Default bf16-MXU path (per perf guidance); loose tolerance vs f32 reference.
    out = my_vit_block(x, p, n_heads=n_heads)
    out = jax.block_until_ready(out)
    assert out.shape == x.shape and out.dtype == x.dtype
    assert jnp.allclose(out, ref, atol=2e-2, rtol=2e-2), "bf16-path mismatch vs reference"

    # f32 compute path: verifies exact forward-pass semantics tightly.
    out_f32 = my_vit_block(x, p, n_heads=n_heads, compute_dtype=jnp.float32)
    out_f32 = jax.block_until_ready(out_f32)
    assert jnp.allclose(out_f32, ref, atol=2e-3, rtol=2e-3), "f32-path mismatch vs reference"

    print("KERNEL_OK")
</pallas_src>

<mosaic_0001>
module attributes {stable_mosaic.version = 11 : i64} {
  func.func @_vit_block_kernel(%arg0: i32, %arg1: memref<1x8x32xf32, #tpu.memory_space<vmem>>, %arg2: memref<1x32xf32, #tpu.memory_space<vmem>>, %arg3: memref<1x32xf32, #tpu.memory_space<vmem>>, %arg4: memref<2x16x48xbf16, #tpu.memory_space<vmem>>, %arg5: memref<2x1x48xf32, #tpu.memory_space<vmem>>, %arg6: memref<1x32xf32, #tpu.memory_space<vmem>>, %arg7: memref<1x32xf32, #tpu.memory_space<vmem>>, %arg8: memref<32x128xbf16, #tpu.memory_space<vmem>>, %arg9: memref<1x128xf32, #tpu.memory_space<vmem>>, %arg10: memref<128x32xbf16, #tpu.memory_space<vmem>>, %arg11: memref<1x32xf32, #tpu.memory_space<vmem>>, %arg12: memref<1x8x32xf32, #tpu.memory_space<vmem>>) attributes {dimension_semantics = [#tpu.dimension_semantics<parallel>], iteration_bounds = array<i64: 2>, scalar_prefetch = 0 : i64, scratch_operands = 0 : i64, tpu.core_type = #tpu.core_type<tc>, window_params = [{transform_indices = @transform_0, window_bounds = array<i64: 1, 8, 32>}, {pipeline_mode = #tpu.pipeline_mode<synchronous>, transform_indices = @transform_1, window_bounds = array<i64: 1, 32>}, {pipeline_mode = #tpu.pipeline_mode<synchronous>, transform_indices = @transform_2, window_bounds = array<i64: 1, 32>}, {pipeline_mode = #tpu.pipeline_mode<synchronous>, transform_indices = @transform_3, window_bounds = array<i64: 2, 16, 48>}, {pipeline_mode = #tpu.pipeline_mode<synchronous>, transform_indices = @transform_4, window_bounds = array<i64: 2, 1, 48>}, {pipeline_mode = #tpu.pipeline_mode<synchronous>, transform_indices = @transform_5, window_bounds = array<i64: 1, 32>}, {pipeline_mode = #tpu.pipeline_mode<synchronous>, transform_indices = @transform_6, window_bounds = array<i64: 1, 32>}, {pipeline_mode = #tpu.pipeline_mode<synchronous>, transform_indices = @transform_7, window_bounds = array<i64: 32, 128>}, {pipeline_mode = #tpu.pipeline_mode<synchronous>, transform_indices = @transform_8, window_bounds = array<i64: 1, 128>}, {pipeline_mode = #tpu.pipeline_mode<synchronous>, transform_indices = @transform_9, window_bounds = array<i64: 128, 32>}, {pipeline_mode = #tpu.pipeline_mode<synchronous>, transform_indices = @transform_10, window_bounds = array<i64: 1, 32>}, {transform_indices = @transform_11, window_bounds = array<i64: 1, 8, 32>}]} {
    %c0 = arith.constant 0 : index
    %c0_0 = arith.constant 0 : index
    %c0_1 = arith.constant 0 : index
    %0 = vector.load %arg1[%c0, %c0_0, %c0_1] : memref<1x8x32xf32, #tpu.memory_space<vmem>>, vector<1x8x32xf32>
    %1 = vector.shape_cast %0 : vector<1x8x32xf32> to vector<8x32xf32>
    %cst = arith.constant dense<0.000000e+00> : vector<8xf32>
    %2 = vector.multi_reduction <add>, %1, %cst [1] : vector<8x32xf32> to vector<8xf32>
    %3 = vector.shape_cast %2 : vector<8xf32> to vector<8x1xf32>
    %cst_2 = arith.constant 3.200000e+01 : f32
    %4 = vector.broadcast %cst_2 : f32 to vector<8x1xf32>
    %5 = arith.divf %3, %4 : vector<8x1xf32>
    %6 = vector.broadcast %5 : vector<8x1xf32> to vector<8x32xf32>
    %7 = arith.subf %1, %6 : vector<8x32xf32>
    %8 = arith.mulf %7, %7 : vector<8x32xf32>
    %cst_3 = arith.constant dense<0.000000e+00> : vector<8xf32>
    %9 = vector.multi_reduction <add>, %8, %cst_3 [1] : vector<8x32xf32> to vector<8xf32>
    %10 = vector.shape_cast %9 : vector<8xf32> to vector<8x1xf32>
    %cst_4 = arith.constant 3.200000e+01 : f32
    %11 = vector.broadcast %cst_4 : f32 to vector<8x1xf32>
    %12 = arith.divf %10, %11 : vector<8x1xf32>
    %13 = vector.broadcast %5 : vector<8x1xf32> to vector<8x32xf32>
    %14 = arith.subf %1, %13 : vector<8x32xf32>
    %cst_5 = arith.constant 9.99999974E-6 : f32
    %15 = vector.broadcast %cst_5 : f32 to vector<8x1xf32>
    %16 = arith.addf %12, %15 : vector<8x1xf32>
    %17 = math.rsqrt %16 : vector<8x1xf32>
    %18 = vector.broadcast %17 : vector<8x1xf32> to vector<8x32xf32>
    %19 = arith.mulf %14, %18 : vector<8x32xf32>
    %c0_6 = arith.constant 0 : index
    %c0_7 = arith.constant 0 : index
    %20 = vector.load %arg2[%c0_6, %c0_7] : memref<1x32xf32, #tpu.memory_space<vmem>>, vector<1x32xf32>
    %21 = vector.broadcast %20 : vector<1x32xf32> to vector<8x32xf32>
    %22 = arith.mulf %19, %21 : vector<8x32xf32>
    %c0_8 = arith.constant 0 : index
    %c0_9 = arith.constant 0 : index
    %23 = vector.load %arg3[%c0_8, %c0_9] : memref<1x32xf32, #tpu.memory_space<vmem>>, vector<1x32xf32>
    %24 = vector.broadcast %23 : vector<1x32xf32> to vector<8x32xf32>
    %25 = arith.addf %22, %24 : vector<8x32xf32>
    %26 = vector.extract_strided_slice %25 {offsets = [0, 0], sizes = [8, 16], strides = [1, 1]} : vector<8x32xf32> to vector<8x16xf32>
    %27 = arith.truncf %26 : vector<8x16xf32> to vector<8x16xbf16>
    %c0_10 = arith.constant 0 : index
    %c0_11 = arith.constant 0 : index
    %c0_12 = arith.constant 0 : index
    %28 = vector.load %arg4[%c0_10, %c0_11, %c0_12] : memref<2x16x48xbf16, #tpu.memory_space<vmem>>, vector<1x16x48xbf16>
    %29 = vector.shape_cast %28 : vector<1x16x48xbf16> to vector<16x48xbf16>
    %cst_13 = arith.constant dense<0.000000e+00> : vector<8x48xf32>
    %30 = tpu.matmul %27, %29, %cst_13 {dimension_numbers = #tpu.dot_dimension_numbers<[1], [0], [0], [1], [0, 0, 1, 1], [], []>} : vector<8x16xbf16>, vector<16x48xbf16>, vector<8x48xf32> -> vector<8x48xf32>
    %c0_14 = arith.constant 0 : index
    %c0_15 = arith.constant 0 : index
    %c0_16 = arith.constant 0 : index
    %31 = vector.load %arg5[%c0_14, %c0_15, %c0_16] : memref<2x1x48xf32, #tpu.memory_space<vmem>>, vector<1x1x48xf32>
    %32 = vector.shape_cast %31 : vector<1x1x48xf32> to vector<1x48xf32>
    %33 = vector.broadcast %32 : vector<1x48xf32> to vector<8x48xf32>
    %34 = arith.addf %30, %33 : vector<8x48xf32>
    %35 = vector.extract_strided_slice %34 {offsets = [0, 0], sizes = [8, 16], strides = [1, 1]} : vector<8x48xf32> to vector<8x16xf32>
    %cst_17 = arith.constant 2.500000e-01 : f32
    %36 = vector.broadcast %cst_17 : f32 to vector<8x16xf32>
    %37 = arith.mulf %35, %36 : vector<8x16xf32>
    %38 = vector.extract_strided_slice %34 {offsets = [0, 16], sizes = [8, 16], strides = [1, 1]} : vector<8x48xf32> to vector<8x16xf32>
    %39 = vector.extract_strided_slice %34 {offsets = [0, 32], sizes = [8, 16], strides = [1, 1]} : vector<8x48xf32> to vector<8x16xf32>
    %40 = arith.truncf %37 : vector<8x16xf32> to vector<8x16xbf16>
    %41 = arith.truncf %38 : vector<8x16xf32> to vector<8x16xbf16>
    %cst_18 = arith.constant dense<0.000000e+00> : vector<8x8xf32>
    %42 = tpu.matmul %40, %41, %cst_18 {dimension_numbers = #tpu.dot_dimension_numbers<[1], [1], [0], [0], [0, 0, 1, 0], [], []>} : vector<8x16xbf16>, vector<8x16xbf16>, vector<8x8xf32> -> vector<8x8xf32>
    %cst_19 = arith.constant dense<0xFF800000> : vector<8xf32>
    %43 = vector.multi_reduction <maximumf>, %42, %cst_19 [1] : vector<8x8xf32> to vector<8xf32>
    %44 = vector.shape_cast %43 : vector<8xf32> to vector<8x1xf32>
    %45 = vector.broadcast %44 : vector<8x1xf32> to vector<8x8xf32>
    %46 = arith.subf %42, %45 : vector<8x8xf32>
    %47 = math.exp %46 : vector<8x8xf32>
    %cst_20 = arith.constant dense<0.000000e+00> : vector<8xf32>
    %48 = vector.multi_reduction <add>, %47, %cst_20 [1] : vector<8x8xf32> to vector<8xf32>
    %49 = vector.shape_cast %48 : vector<8xf32> to vector<8x1xf32>
    %50 = tpu.reciprocal %49 {approx = true} : vector<8x1xf32> -> vector<8x1xf32>
    %51 = vector.broadcast %50 : vector<8x1xf32> to vector<8x8xf32>
    %52 = arith.mulf %47, %51 : vector<8x8xf32>
    %53 = arith.truncf %52 : vector<8x8xf32> to vector<8x8xbf16>
    %54 = arith.truncf %39 : vector<8x16xf32> to vector<8x16xbf16>
    %cst_21 = arith.constant dense<0.000000e+00> : vector<8x16xf32>
    %55 = tpu.matmul %53, %54, %cst_21 {dimension_numbers = #tpu.dot_dimension_numbers<[1], [0], [0], [1], [0, 0, 1, 1], [], []>} : vector<8x8xbf16>, vector<8x16xbf16>, vector<8x16xf32> -> vector<8x16xf32>
    %56 = vector.extract_strided_slice %25 {offsets = [0, 16], sizes = [8, 16], strides = [1, 1]} : vector<8x32xf32> to vector<8x16xf32>
    %57 = arith.truncf %56 : vector<8x16xf32> to vector<8x16xbf16>
    %c1 = arith.constant 1 : index
    %c0_22 = arith.constant 0 : index
    %c0_23 = arith.constant 0 : index
    %58 = vector.load %arg4[%c1, %c0_22, %c0_23] : memref<2x16x48xbf16, #tpu.memory_space<vmem>>, vector<1x16x48xbf16>
    %59 = vector.shape_cast %58 : vector<1x16x48xbf16> to vector<16x48xbf16>
    %cst_24 = arith.constant dense<0.000000e+00> : vector<8x48xf32>
    %60 = tpu.matmul %57, %59, %cst_24 {dimension_numbers = #tpu.dot_dimension_numbers<[1], [0], [0], [1], [0, 0, 1, 1], [], []>} : vector<8x16xbf16>, vector<16x48xbf16>, vector<8x48xf32> -> vector<8x48xf32>
    %c1_25 = arith.constant 1 : index
    %c0_26 = arith.constant 0 : index
    %c0_27 = arith.constant 0 : index
    %61 = vector.load %arg5[%c1_25, %c0_26, %c0_27] : memref<2x1x48xf32, #tpu.memory_space<vmem>>, vector<1x1x48xf32>
    %62 = vector.shape_cast %61 : vector<1x1x48xf32> to vector<1x48xf32>
    %63 = vector.broadcast %62 : vector<1x48xf32> to vector<8x48xf32>
    %64 = arith.addf %60, %63 : vector<8x48xf32>
    %65 = vector.extract_strided_slice %64 {offsets = [0, 0], sizes = [8, 16], strides = [1, 1]} : vector<8x48xf32> to vector<8x16xf32>
    %cst_28 = arith.constant 2.500000e-01 : f32
    %66 = vector.broadcast %cst_28 : f32 to vector<8x16xf32>
    %67 = arith.mulf %65, %66 : vector<8x16xf32>
    %68 = vector.extract_strided_slice %64 {offsets = [0, 16], sizes = [8, 16], strides = [1, 1]} : vector<8x48xf32> to vector<8x16xf32>
    %69 = vector.extract_strided_slice %64 {offsets = [0, 32], sizes = [8, 16], strides = [1, 1]} : vector<8x48xf32> to vector<8x16xf32>
    %70 = arith.truncf %67 : vector<8x16xf32> to vector<8x16xbf16>
    %71 = arith.truncf %68 : vector<8x16xf32> to vector<8x16xbf16>
    %cst_29 = arith.constant dense<0.000000e+00> : vector<8x8xf32>
    %72 = tpu.matmul %70, %71, %cst_29 {dimension_numbers = #tpu.dot_dimension_numbers<[1], [1], [0], [0], [0, 0, 1, 0], [], []>} : vector<8x16xbf16>, vector<8x16xbf16>, vector<8x8xf32> -> vector<8x8xf32>
    %cst_30 = arith.constant dense<0xFF800000> : vector<8xf32>
    %73 = vector.multi_reduction <maximumf>, %72, %cst_30 [1] : vector<8x8xf32> to vector<8xf32>
    %74 = vector.shape_cast %73 : vector<8xf32> to vector<8x1xf32>
    %75 = vector.broadcast %74 : vector<8x1xf32> to vector<8x8xf32>
    %76 = arith.subf %72, %75 : vector<8x8xf32>
    %77 = math.exp %76 : vector<8x8xf32>
    %cst_31 = arith.constant dense<0.000000e+00> : vector<8xf32>
    %78 = vector.multi_reduction <add>, %77, %cst_31 [1] : vector<8x8xf32> to vector<8xf32>
    %79 = vector.shape_cast %78 : vector<8xf32> to vector<8x1xf32>
    %80 = tpu.reciprocal %79 {approx = true} : vector<8x1xf32> -> vector<8x1xf32>
    %81 = vector.broadcast %80 : vector<8x1xf32> to vector<8x8xf32>
    %82 = arith.mulf %77, %81 : vector<8x8xf32>
    %83 = arith.truncf %82 : vector<8x8xf32> to vector<8x8xbf16>
    %84 = arith.truncf %69 : vector<8x16xf32> to vector<8x16xbf16>
    %cst_32 = arith.constant dense<0.000000e+00> : vector<8x16xf32>
    %85 = tpu.matmul %83, %84, %cst_32 {dimension_numbers = #tpu.dot_dimension_numbers<[1], [0], [0], [1], [0, 0, 1, 1], [], []>} : vector<8x8xbf16>, vector<8x16xbf16>, vector<8x16xf32> -> vector<8x16xf32>
    %86 = tpu.concatenate %55, %85 in 1 : vector<8x16xf32>, vector<8x16xf32> -> vector<8x32xf32>
    %87 = arith.addf %1, %86 : vector<8x32xf32>
    %cst_33 = arith.constant dense<0.000000e+00> : vector<8xf32>
    %88 = vector.multi_reduction <add>, %87, %cst_33 [1] : vector<8x32xf32> to vector<8xf32>
    %89 = vector.shape_cast %88 : vector<8xf32> to vector<8x1xf32>
    %cst_34 = arith.constant 3.200000e+01 : f32
    %90 = vector.broadcast %cst_34 : f32 to vector<8x1xf32>
    %91 = arith.divf %89, %90 : vector<8x1xf32>
    %92 = vector.broadcast %91 : vector<8x1xf32> to vector<8x32xf32>
    %93 = arith.subf %87, %92 : vector<8x32xf32>
    %94 = arith.mulf %93, %93 : vector<8x32xf32>
    %cst_35 = arith.constant dense<0.000000e+00> : vector<8xf32>
    %95 = vector.multi_reduction <add>, %94, %cst_35 [1] : vector<8x32xf32> to vector<8xf32>
    %96 = vector.shape_cast %95 : vector<8xf32> to vector<8x1xf32>
    %cst_36 = arith.constant 3.200000e+01 : f32
    %97 = vector.broadcast %cst_36 : f32 to vector<8x1xf32>
    %98 = arith.divf %96, %97 : vector<8x1xf32>
    %99 = vector.broadcast %91 : vector<8x1xf32> to vector<8x32xf32>
    %100 = arith.subf %87, %99 : vector<8x32xf32>
    %cst_37 = arith.constant 9.99999974E-6 : f32
    %101 = vector.broadcast %cst_37 : f32 to vector<8x1xf32>
    %102 = arith.addf %98, %101 : vector<8x1xf32>
    %103 = math.rsqrt %102 : vector<8x1xf32>
    %104 = vector.broadcast %103 : vector<8x1xf32> to vector<8x32xf32>
    %105 = arith.mulf %100, %104 : vector<8x32xf32>
    %c0_38 = arith.constant 0 : index
    %c0_39 = arith.constant 0 : index
    %106 = vector.load %arg6[%c0_38, %c0_39] : memref<1x32xf32, #tpu.memory_space<vmem>>, vector<1x32xf32>
    %107 = vector.broadcast %106 : vector<1x32xf32> to vector<8x32xf32>
    %108 = arith.mulf %105, %107 : vector<8x32xf32>
    %c0_40 = arith.constant 0 : index
    %c0_41 = arith.constant 0 : index
    %109 = vector.load %arg7[%c0_40, %c0_41] : memref<1x32xf32, #tpu.memory_space<vmem>>, vector<1x32xf32>
    %110 = vector.broadcast %109 : vector<1x32xf32> to vector<8x32xf32>
    %111 = arith.addf %108, %110 : vector<8x32xf32>
    %112 = arith.truncf %111 : vector<8x32xf32> to vector<8x32xbf16>
    %c0_42 = arith.constant 0 : index
    %c0_43 = arith.constant 0 : index
    %113 = vector.load %arg8[%c0_42, %c0_43] : memref<32x128xbf16, #tpu.memory_space<vmem>>, vector<32x128xbf16>
    %cst_44 = arith.constant dense<0.000000e+00> : vector<8x128xf32>
    %114 = tpu.matmul %112, %113, %cst_44 {dimension_numbers = #tpu.dot_dimension_numbers<[1], [0], [0], [1], [0, 0, 1, 1], [], []>} : vector<8x32xbf16>, vector<32x128xbf16>, vector<8x128xf32> -> vector<8x128xf32>
    %c0_45 = arith.constant 0 : index
    %c0_46 = arith.constant 0 : index
    %115 = vector.load %arg9[%c0_45, %c0_46] : memref<1x128xf32, #tpu.memory_space<vmem>>, vector<1x128xf32>
    %116 = vector.broadcast %115 : vector<1x128xf32> to vector<8x128xf32>
    %117 = arith.addf %114, %116 : vector<8x128xf32>
    %118 = arith.mulf %117, %117 : vector<8x128xf32>
    %119 = arith.mulf %117, %118 : vector<8x128xf32>
    %cst_47 = arith.constant 4.471500e-02 : f32
    %120 = vector.broadcast %cst_47 : f32 to vector<8x128xf32>
    %121 = arith.mulf %120, %119 : vector<8x128xf32>
    %122 = arith.addf %117, %121 : vector<8x128xf32>
    %cst_48 = arith.constant 0.797884583 : f32
    %123 = vector.broadcast %cst_48 : f32 to vector<8x128xf32>
    %124 = arith.mulf %123, %122 : vector<8x128xf32>
    %125 = math.tanh %124 : vector<8x128xf32>
    %cst_49 = arith.constant 1.000000e+00 : f32
    %126 = vector.broadcast %cst_49 : f32 to vector<8x128xf32>
    %127 = arith.addf %126, %125 : vector<8x128xf32>
    %cst_50 = arith.constant 5.000000e-01 : f32
    %128 = vector.broadcast %cst_50 : f32 to vector<8x128xf32>
    %129 = arith.mulf %128, %127 : vector<8x128xf32>
    %130 = arith.mulf %117, %129 : vector<8x128xf32>
    %131 = arith.truncf %130 : vector<8x128xf32> to vector<8x128xbf16>
    %c0_51 = arith.constant 0 : index
    %c0_52 = arith.constant 0 : index
    %132 = vector.load %arg10[%c0_51, %c0_52] : memref<128x32xbf16, #tpu.memory_space<vmem>>, vector<128x32xbf16>
    %cst_53 = arith.constant dense<0.000000e+00> : vector<8x32xf32>
    %133 = tpu.matmul %131, %132, %cst_53 {dimension_numbers = #tpu.dot_dimension_numbers<[1], [0], [0], [1], [0, 0, 1, 1], [], []>} : vector<8x128xbf16>, vector<128x32xbf16>, vector<8x32xf32> -> vector<8x32xf32>
    %c0_54 = arith.constant 0 : index
    %c0_55 = arith.constant 0 : index
    %134 = vector.load %arg11[%c0_54, %c0_55] : memref<1x32xf32, #tpu.memory_space<vmem>>, vector<1x32xf32>
    %135 = vector.broadcast %134 : vector<1x32xf32> to vector<8x32xf32>
    %136 = arith.addf %133, %135 : vector<8x32xf32>
    %137 = arith.addf %87, %136 : vector<8x32xf32>
    %c0_56 = arith.constant 0 : index
    %c0_57 = arith.constant 0 : index
    %c0_58 = arith.constant 0 : index
    %138 = vector.load %arg12[%c0_56, %c0_57, %c0_58] : memref<1x8x32xf32, #tpu.memory_space<vmem>>, vector<1x8x32xf32>
    %139 = vector.shape_cast %138 : vector<1x8x32xf32> to vector<8x32xf32>
    %140 = vector.shape_cast %137 : vector<8x32xf32> to vector<1x8x32xf32>
    tpu.vector_store %arg12[%c0_56, %c0_57, %c0_58], %140 {strides = array<i32>} : memref<1x8x32xf32, #tpu.memory_space<vmem>>, vector<1x8x32xf32>,
    return
  }
  func.func @transform_0(%arg0: i32) -> (i32, i32, i32) {
    %c0_i32 = arith.constant 0 : i32
    %c0_i32_0 = arith.constant 0 : i32
    %c0_i32_1 = arith.constant 0 : i32
    return %arg0, %c0_i32, %c0_i32_0 : i32, i32, i32
  }
  func.func @transform_1(%arg0: i32) -> (i32, i32) {
    %c0_i32 = arith.constant 0 : i32
    %c0_i32_0 = arith.constant 0 : i32
    %c0_i32_1 = arith.constant 0 : i32
    return %c0_i32, %c0_i32_0 : i32, i32
  }
  func.func @transform_2(%arg0: i32) -> (i32, i32) {
    %c0_i32 = arith.constant 0 : i32
    %c0_i32_0 = arith.constant 0 : i32
    %c0_i32_1 = arith.constant 0 : i32
    return %c0_i32, %c0_i32_0 : i32, i32
  }
  func.func @transform_3(%arg0: i32) -> (i32, i32, i32) {
    %c0_i32 = arith.constant 0 : i32
    %c0_i32_0 = arith.constant 0 : i32
    %c0_i32_1 = arith.constant 0 : i32
    %c0_i32_2 = arith.constant 0 : i32
    return %c0_i32, %c0_i32_0, %c0_i32_1 : i32, i32, i32
  }
  func.func @transform_4(%arg0: i32) -> (i32, i32, i32) {
    %c0_i32 = arith.constant 0 : i32
    %c0_i32_0 = arith.constant 0 : i32
    %c0_i32_1 = arith.constant 0 : i32
    %c0_i32_2 = arith.constant 0 : i32
    return %c0_i32, %c0_i32_0, %c0_i32_1 : i32, i32, i32
  }
  func.func @transform_5(%arg0: i32) -> (i32, i32) {
    %c0_i32 = arith.constant 0 : i32
    %c0_i32_0 = arith.constant 0 : i32
    %c0_i32_1 = arith.constant 0 : i32
    return %c0_i32, %c0_i32_0 : i32, i32
  }
  func.func @transform_6(%arg0: i32) -> (i32, i32) {
    %c0_i32 = arith.constant 0 : i32
    %c0_i32_0 = arith.constant 0 : i32
    %c0_i32_1 = arith.constant 0 : i32
    return %c0_i32, %c0_i32_0 : i32, i32
  }
  func.func @transform_7(%arg0: i32) -> (i32, i32) {
    %c0_i32 = arith.constant 0 : i32
    %c0_i32_0 = arith.constant 0 : i32
    %c0_i32_1 = arith.constant 0 : i32
    return %c0_i32, %c0_i32_0 : i32, i32
  }
  func.func @transform_8(%arg0: i32) -> (i32, i32) {
    %c0_i32 = arith.constant 0 : i32
    %c0_i32_0 = arith.constant 0 : i32
    %c0_i32_1 = arith.constant 0 : i32
    return %c0_i32, %c0_i32_0 : i32, i32
  }
  func.func @transform_9(%arg0: i32) -> (i32, i32) {
    %c0_i32 = arith.constant 0 : i32
    %c0_i32_0 = arith.constant 0 : i32
    %c0_i32_1 = arith.constant 0 : i32
    return %c0_i32, %c0_i32_0 : i32, i32
  }
  func.func @transform_10(%arg0: i32) -> (i32, i32) {
    %c0_i32 = arith.constant 0 : i32
    %c0_i32_0 = arith.constant 0 : i32
    %c0_i32_1 = arith.constant 0 : i32
    return %c0_i32, %c0_i32_0 : i32, i32
  }
  func.func @transform_11(%arg0: i32) -> (i32, i32, i32) {
    %c0_i32 = arith.constant 0 : i32
    %c0_i32_0 = arith.constant 0 : i32
    %c0_i32_1 = arith.constant 0 : i32
    return %arg0, %c0_i32, %c0_i32_0 : i32, i32, i32
  }
}

module attributes {stable_mosaic.version = 11 : i64} {
  func.func @_vit_block_kernel(%arg0: i32, %arg1: memref<1x8x32xf32, #tpu.memory_space<vmem>>, %arg2: memref<1x32xf32, #tpu.memory_space<vmem>>, %arg3: memref<1x32xf32, #tpu.memory_space<vmem>>, %arg4: memref<2x16x48xbf16, #tpu.memory_space<vmem>>, %arg5: memref<2x1x48xf32, #tpu.memory_space<vmem>>, %arg6: memref<1x32xf32, #tpu.memory_space<vmem>>, %arg7: memref<1x32xf32, #tpu.memory_space<vmem>>, %arg8: memref<32x128xbf16, #tpu.memory_space<vmem>>, %arg9: memref<1x128xf32, #tpu.memory_space<vmem>>, %arg10: memref<128x32xbf16, #tpu.memory_space<vmem>>, %arg11: memref<1x32xf32, #tpu.memory_space<vmem>>, %arg12: memref<1x8x32xf32, #tpu.memory_space<vmem>>) attributes {dimension_semantics = [#tpu.dimension_semantics<parallel>], iteration_bounds = array<i64: 2>, scalar_prefetch = 0 : i64, scratch_operands = 0 : i64, tpu.core_type = #tpu.core_type<tc>, window_params = [{transform_indices = @transform_0, window_bounds = array<i64: 1, 8, 32>}, {pipeline_mode = #tpu.pipeline_mode<synchronous>, transform_indices = @transform_1, window_bounds = array<i64: 1, 32>}, {pipeline_mode = #tpu.pipeline_mode<synchronous>, transform_indices = @transform_2, window_bounds = array<i64: 1, 32>}, {pipeline_mode = #tpu.pipeline_mode<synchronous>, transform_indices = @transform_3, window_bounds = array<i64: 2, 16, 48>}, {pipeline_mode = #tpu.pipeline_mode<synchronous>, transform_indices = @transform_4, window_bounds = array<i64: 2, 1, 48>}, {pipeline_mode = #tpu.pipeline_mode<synchronous>, transform_indices = @transform_5, window_bounds = array<i64: 1, 32>}, {pipeline_mode = #tpu.pipeline_mode<synchronous>, transform_indices = @transform_6, window_bounds = array<i64: 1, 32>}, {pipeline_mode = #tpu.pipeline_mode<synchronous>, transform_indices = @transform_7, window_bounds = array<i64: 32, 128>}, {pipeline_mode = #tpu.pipeline_mode<synchronous>, transform_indices = @transform_8, window_bounds = array<i64: 1, 128>}, {pipeline_mode = #tpu.pipeline_mode<synchronous>, transform_indices = @transform_9, window_bounds = array<i64: 128, 32>}, {pipeline_mode = #tpu.pipeline_mode<synchronous>, transform_indices = @transform_10, window_bounds = array<i64: 1, 32>}, {transform_indices = @transform_11, window_bounds = array<i64: 1, 8, 32>}]} {
    %c0 = arith.constant 0 : index
    %c0_0 = arith.constant 0 : index
    %c0_1 = arith.constant 0 : index
    %0 = vector.load %arg1[%c0, %c0_0, %c0_1] : memref<1x8x32xf32, #tpu.memory_space<vmem>>, vector<1x8x32xf32>
    %1 = vector.shape_cast %0 : vector<1x8x32xf32> to vector<8x32xf32>
    %cst = arith.constant dense<0.000000e+00> : vector<8xf32>
    %2 = vector.multi_reduction <add>, %1, %cst [1] : vector<8x32xf32> to vector<8xf32>
    %3 = vector.shape_cast %2 : vector<8xf32> to vector<8x1xf32>
    %cst_2 = arith.constant 3.200000e+01 : f32
    %4 = vector.broadcast %cst_2 : f32 to vector<8x1xf32>
    %5 = arith.divf %3, %4 : vector<8x1xf32>
    %6 = vector.broadcast %5 : vector<8x1xf32> to vector<8x32xf32>
    %7 = arith.subf %1, %6 : vector<8x32xf32>
    %8 = arith.mulf %7, %7 : vector<8x32xf32>
    %cst_3 = arith.constant dense<0.000000e+00> : vector<8xf32>
    %9 = vector.multi_reduction <add>, %8, %cst_3 [1] : vector<8x32xf32> to vector<8xf32>
    %10 = vector.shape_cast %9 : vector<8xf32> to vector<8x1xf32>
    %cst_4 = arith.constant 3.200000e+01 : f32
    %11 = vector.broadcast %cst_4 : f32 to vector<8x1xf32>
    %12 = arith.divf %10, %11 : vector<8x1xf32>
    %13 = vector.broadcast %5 : vector<8x1xf32> to vector<8x32xf32>
    %14 = arith.subf %1, %13 : vector<8x32xf32>
    %cst_5 = arith.constant 9.99999974E-6 : f32
    %15 = vector.broadcast %cst_5 : f32 to vector<8x1xf32>
    %16 = arith.addf %12, %15 : vector<8x1xf32>
    %17 = math.rsqrt %16 : vector<8x1xf32>
    %18 = vector.broadcast %17 : vector<8x1xf32> to vector<8x32xf32>
    %19 = arith.mulf %14, %18 : vector<8x32xf32>
    %c0_6 = arith.constant 0 : index
    %c0_7 = arith.constant 0 : index
    %20 = vector.load %arg2[%c0_6, %c0_7] : memref<1x32xf32, #tpu.memory_space<vmem>>, vector<1x32xf32>
    %21 = vector.broadcast %20 : vector<1x32xf32> to vector<8x32xf32>
    %22 = arith.mulf %19, %21 : vector<8x32xf32>
    %c0_8 = arith.constant 0 : index
    %c0_9 = arith.constant 0 : index
    %23 = vector.load %arg3[%c0_8, %c0_9] : memref<1x32xf32, #tpu.memory_space<vmem>>, vector<1x32xf32>
    %24 = vector.broadcast %23 : vector<1x32xf32> to vector<8x32xf32>
    %25 = arith.addf %22, %24 : vector<8x32xf32>
    %26 = vector.extract_strided_slice %25 {offsets = [0, 0], sizes = [8, 16], strides = [1, 1]} : vector<8x32xf32> to vector<8x16xf32>
    %27 = arith.truncf %26 : vector<8x16xf32> to vector<8x16xbf16>
    %c0_10 = arith.constant 0 : index
    %c0_11 = arith.constant 0 : index
    %c0_12 = arith.constant 0 : index
    %28 = vector.load %arg4[%c0_10, %c0_11, %c0_12] : memref<2x16x48xbf16, #tpu.memory_space<vmem>>, vector<1x16x48xbf16>
    %29 = vector.shape_cast %28 : vector<1x16x48xbf16> to vector<16x48xbf16>
    %cst_13 = arith.constant dense<0.000000e+00> : vector<8x48xf32>
    %30 = tpu.matmul %27, %29, %cst_13 {dimension_numbers = #tpu.dot_dimension_numbers<[1], [0], [0], [1], [0, 0, 1, 1], [], []>} : vector<8x16xbf16>, vector<16x48xbf16>, vector<8x48xf32> -> vector<8x48xf32>
    %c0_14 = arith.constant 0 : index
    %c0_15 = arith.constant 0 : index
    %c0_16 = arith.constant 0 : index
    %31 = vector.load %arg5[%c0_14, %c0_15, %c0_16] : memref<2x1x48xf32, #tpu.memory_space<vmem>>, vector<1x1x48xf32>
    %32 = vector.shape_cast %31 : vector<1x1x48xf32> to vector<1x48xf32>
    %33 = vector.broadcast %32 : vector<1x48xf32> to vector<8x48xf32>
    %34 = arith.addf %30, %33 : vector<8x48xf32>
    %35 = vector.extract_strided_slice %34 {offsets = [0, 0], sizes = [8, 16], strides = [1, 1]} : vector<8x48xf32> to vector<8x16xf32>
    %cst_17 = arith.constant 2.500000e-01 : f32
    %36 = vector.broadcast %cst_17 : f32 to vector<8x16xf32>
    %37 = arith.mulf %35, %36 : vector<8x16xf32>
    %38 = vector.extract_strided_slice %34 {offsets = [0, 16], sizes = [8, 16], strides = [1, 1]} : vector<8x48xf32> to vector<8x16xf32>
    %39 = vector.extract_strided_slice %34 {offsets = [0, 32], sizes = [8, 16], strides = [1, 1]} : vector<8x48xf32> to vector<8x16xf32>
    %40 = arith.truncf %37 : vector<8x16xf32> to vector<8x16xbf16>
    %41 = arith.truncf %38 : vector<8x16xf32> to vector<8x16xbf16>
    %cst_18 = arith.constant dense<0.000000e+00> : vector<8x8xf32>
    %42 = tpu.matmul %40, %41, %cst_18 {dimension_numbers = #tpu.dot_dimension_numbers<[1], [1], [0], [0], [0, 0, 1, 0], [], []>} : vector<8x16xbf16>, vector<8x16xbf16>, vector<8x8xf32> -> vector<8x8xf32>
    %cst_19 = arith.constant dense<0xFF800000> : vector<8xf32>
    %43 = vector.multi_reduction <maximumf>, %42, %cst_19 [1] : vector<8x8xf32> to vector<8xf32>
    %44 = vector.shape_cast %43 : vector<8xf32> to vector<8x1xf32>
    %45 = vector.broadcast %44 : vector<8x1xf32> to vector<8x8xf32>
    %46 = arith.subf %42, %45 : vector<8x8xf32>
    %47 = math.exp %46 : vector<8x8xf32>
    %cst_20 = arith.constant dense<0.000000e+00> : vector<8xf32>
    %48 = vector.multi_reduction <add>, %47, %cst_20 [1] : vector<8x8xf32> to vector<8xf32>
    %49 = vector.shape_cast %48 : vector<8xf32> to vector<8x1xf32>
    %50 = tpu.reciprocal %49 {approx = true} : vector<8x1xf32> -> vector<8x1xf32>
    %51 = vector.broadcast %50 : vector<8x1xf32> to vector<8x8xf32>
    %52 = arith.mulf %47, %51 : vector<8x8xf32>
    %53 = arith.truncf %52 : vector<8x8xf32> to vector<8x8xbf16>
    %54 = arith.truncf %39 : vector<8x16xf32> to vector<8x16xbf16>
    %cst_21 = arith.constant dense<0.000000e+00> : vector<8x16xf32>
    %55 = tpu.matmul %53, %54, %cst_21 {dimension_numbers = #tpu.dot_dimension_numbers<[1], [0], [0], [1], [0, 0, 1, 1], [], []>} : vector<8x8xbf16>, vector<8x16xbf16>, vector<8x16xf32> -> vector<8x16xf32>
    %56 = vector.extract_strided_slice %25 {offsets = [0, 16], sizes = [8, 16], strides = [1, 1]} : vector<8x32xf32> to vector<8x16xf32>
    %57 = arith.truncf %56 : vector<8x16xf32> to vector<8x16xbf16>
    %c1 = arith.constant 1 : index
    %c0_22 = arith.constant 0 : index
    %c0_23 = arith.constant 0 : index
    %58 = vector.load %arg4[%c1, %c0_22, %c0_23] : memref<2x16x48xbf16, #tpu.memory_space<vmem>>, vector<1x16x48xbf16>
    %59 = vector.shape_cast %58 : vector<1x16x48xbf16> to vector<16x48xbf16>
    %cst_24 = arith.constant dense<0.000000e+00> : vector<8x48xf32>
    %60 = tpu.matmul %57, %59, %cst_24 {dimension_numbers = #tpu.dot_dimension_numbers<[1], [0], [0], [1], [0, 0, 1, 1], [], []>} : vector<8x16xbf16>, vector<16x48xbf16>, vector<8x48xf32> -> vector<8x48xf32>
    %c1_25 = arith.constant 1 : index
    %c0_26 = arith.constant 0 : index
    %c0_27 = arith.constant 0 : index
    %61 = vector.load %arg5[%c1_25, %c0_26, %c0_27] : memref<2x1x48xf32, #tpu.memory_space<vmem>>, vector<1x1x48xf32>
    %62 = vector.shape_cast %61 : vector<1x1x48xf32> to vector<1x48xf32>
    %63 = vector.broadcast %62 : vector<1x48xf32> to vector<8x48xf32>
    %64 = arith.addf %60, %63 : vector<8x48xf32>
    %65 = vector.extract_strided_slice %64 {offsets = [0, 0], sizes = [8, 16], strides = [1, 1]} : vector<8x48xf32> to vector<8x16xf32>
    %cst_28 = arith.constant 2.500000e-01 : f32
    %66 = vector.broadcast %cst_28 : f32 to vector<8x16xf32>
    %67 = arith.mulf %65, %66 : vector<8x16xf32>
    %68 = vector.extract_strided_slice %64 {offsets = [0, 16], sizes = [8, 16], strides = [1, 1]} : vector<8x48xf32> to vector<8x16xf32>
    %69 = vector.extract_strided_slice %64 {offsets = [0, 32], sizes = [8, 16], strides = [1, 1]} : vector<8x48xf32> to vector<8x16xf32>
    %70 = arith.truncf %67 : vector<8x16xf32> to vector<8x16xbf16>
    %71 = arith.truncf %68 : vector<8x16xf32> to vector<8x16xbf16>
    %cst_29 = arith.constant dense<0.000000e+00> : vector<8x8xf32>
    %72 = tpu.matmul %70, %71, %cst_29 {dimension_numbers = #tpu.dot_dimension_numbers<[1], [1], [0], [0], [0, 0, 1, 0], [], []>} : vector<8x16xbf16>, vector<8x16xbf16>, vector<8x8xf32> -> vector<8x8xf32>
    %cst_30 = arith.constant dense<0xFF800000> : vector<8xf32>
    %73 = vector.multi_reduction <maximumf>, %72, %cst_30 [1] : vector<8x8xf32> to vector<8xf32>
    %74 = vector.shape_cast %73 : vector<8xf32> to vector<8x1xf32>
    %75 = vector.broadcast %74 : vector<8x1xf32> to vector<8x8xf32>
    %76 = arith.subf %72, %75 : vector<8x8xf32>
    %77 = math.exp %76 : vector<8x8xf32>
    %cst_31 = arith.constant dense<0.000000e+00> : vector<8xf32>
    %78 = vector.multi_reduction <add>, %77, %cst_31 [1] : vector<8x8xf32> to vector<8xf32>
    %79 = vector.shape_cast %78 : vector<8xf32> to vector<8x1xf32>
    %80 = tpu.reciprocal %79 {approx = true} : vector<8x1xf32> -> vector<8x1xf32>
    %81 = vector.broadcast %80 : vector<8x1xf32> to vector<8x8xf32>
    %82 = arith.mulf %77, %81 : vector<8x8xf32>
    %83 = arith.truncf %82 : vector<8x8xf32> to vector<8x8xbf16>
    %84 = arith.truncf %69 : vector<8x16xf32> to vector<8x16xbf16>
    %cst_32 = arith.constant dense<0.000000e+00> : vector<8x16xf32>
    %85 = tpu.matmul %83, %84, %cst_32 {dimension_numbers = #tpu.dot_dimension_numbers<[1], [0], [0], [1], [0, 0, 1, 1], [], []>} : vector<8x8xbf16>, vector<8x16xbf16>, vector<8x16xf32> -> vector<8x16xf32>
    %86 = tpu.concatenate %55, %85 in 1 : vector<8x16xf32>, vector<8x16xf32> -> vector<8x32xf32>
    %87 = arith.addf %1, %86 : vector<8x32xf32>
    %cst_33 = arith.constant dense<0.000000e+00> : vector<8xf32>
    %88 = vector.multi_reduction <add>, %87, %cst_33 [1] : vector<8x32xf32> to vector<8xf32>
    %89 = vector.shape_cast %88 : vector<8xf32> to vector<8x1xf32>
    %cst_34 = arith.constant 3.200000e+01 : f32
    %90 = vector.broadcast %cst_34 : f32 to vector<8x1xf32>
    %91 = arith.divf %89, %90 : vector<8x1xf32>
    %92 = vector.broadcast %91 : vector<8x1xf32> to vector<8x32xf32>
    %93 = arith.subf %87, %92 : vector<8x32xf32>
    %94 = arith.mulf %93, %93 : vector<8x32xf32>
    %cst_35 = arith.constant dense<0.000000e+00> : vector<8xf32>
    %95 = vector.multi_reduction <add>, %94, %cst_35 [1] : vector<8x32xf32> to vector<8xf32>
    %96 = vector.shape_cast %95 : vector<8xf32> to vector<8x1xf32>
    %cst_36 = arith.constant 3.200000e+01 : f32
    %97 = vector.broadcast %cst_36 : f32 to vector<8x1xf32>
    %98 = arith.divf %96, %97 : vector<8x1xf32>
    %99 = vector.broadcast %91 : vector<8x1xf32> to vector<8x32xf32>
    %100 = arith.subf %87, %99 : vector<8x32xf32>
    %cst_37 = arith.constant 9.99999974E-6 : f32
    %101 = vector.broadcast %cst_37 : f32 to vector<8x1xf32>
    %102 = arith.addf %98, %101 : vector<8x1xf32>
    %103 = math.rsqrt %102 : vector<8x1xf32>
    %104 = vector.broadcast %103 : vector<8x1xf32> to vector<8x32xf32>
    %105 = arith.mulf %100, %104 : vector<8x32xf32>
    %c0_38 = arith.constant 0 : index
    %c0_39 = arith.constant 0 : index
    %106 = vector.load %arg6[%c0_38, %c0_39] : memref<1x32xf32, #tpu.memory_space<vmem>>, vector<1x32xf32>
    %107 = vector.broadcast %106 : vector<1x32xf32> to vector<8x32xf32>
    %108 = arith.mulf %105, %107 : vector<8x32xf32>
    %c0_40 = arith.constant 0 : index
    %c0_41 = arith.constant 0 : index
    %109 = vector.load %arg7[%c0_40, %c0_41] : memref<1x32xf32, #tpu.memory_space<vmem>>, vector<1x32xf32>
    %110 = vector.broadcast %109 : vector<1x32xf32> to vector<8x32xf32>
    %111 = arith.addf %108, %110 : vector<8x32xf32>
    %112 = arith.truncf %111 : vector<8x32xf32> to vector<8x32xbf16>
    %c0_42 = arith.constant 0 : index
    %c0_43 = arith.constant 0 : index
    %113 = vector.load %arg8[%c0_42, %c0_43] : memref<32x128xbf16, #tpu.memory_space<vmem>>, vector<32x128xbf16>
    %cst_44 = arith.constant dense<0.000000e+00> : vector<8x128xf32>
    %114 = tpu.matmul %112, %113, %cst_44 {dimension_numbers = #tpu.dot_dimension_numbers<[1], [0], [0], [1], [0, 0, 1, 1], [], []>} : vector<8x32xbf16>, vector<32x128xbf16>, vector<8x128xf32> -> vector<8x128xf32>
    %c0_45 = arith.constant 0 : index
    %c0_46 = arith.constant 0 : index
    %115 = vector.load %arg9[%c0_45, %c0_46] : memref<1x128xf32, #tpu.memory_space<vmem>>, vector<1x128xf32>
    %116 = vector.broadcast %115 : vector<1x128xf32> to vector<8x128xf32>
    %117 = arith.addf %114, %116 : vector<8x128xf32>
    %118 = arith.mulf %117, %117 : vector<8x128xf32>
    %119 = arith.mulf %117, %118 : vector<8x128xf32>
    %cst_47 = arith.constant 4.471500e-02 : f32
    %120 = vector.broadcast %cst_47 : f32 to vector<8x128xf32>
    %121 = arith.mulf %120, %119 : vector<8x128xf32>
    %122 = arith.addf %117, %121 : vector<8x128xf32>
    %cst_48 = arith.constant 0.797884583 : f32
    %123 = vector.broadcast %cst_48 : f32 to vector<8x128xf32>
    %124 = arith.mulf %123, %122 : vector<8x128xf32>
    %125 = math.tanh %124 : vector<8x128xf32>
    %cst_49 = arith.constant 1.000000e+00 : f32
    %126 = vector.broadcast %cst_49 : f32 to vector<8x128xf32>
    %127 = arith.addf %126, %125 : vector<8x128xf32>
    %cst_50 = arith.constant 5.000000e-01 : f32
    %128 = vector.broadcast %cst_50 : f32 to vector<8x128xf32>
    %129 = arith.mulf %128, %127 : vector<8x128xf32>
    %130 = arith.mulf %117, %129 : vector<8x128xf32>
    %131 = arith.truncf %130 : vector<8x128xf32> to vector<8x128xbf16>
    %c0_51 = arith.constant 0 : index
    %c0_52 = arith.constant 0 : index
    %132 = vector.load %arg10[%c0_51, %c0_52] : memref<128x32xbf16, #tpu.memory_space<vmem>>, vector<128x32xbf16>
    %cst_53 = arith.constant dense<0.000000e+00> : vector<8x32xf32>
    %133 = tpu.matmul %131, %132, %cst_53 {dimension_numbers = #tpu.dot_dimension_numbers<[1], [0], [0], [1], [0, 0, 1, 1], [], []>} : vector<8x128xbf16>, vector<128x32xbf16>, vector<8x32xf32> -> vector<8x32xf32>
    %c0_54 = arith.constant 0 : index
    %c0_55 = arith.constant 0 : index
    %134 = vector.load %arg11[%c0_54, %c0_55] : memref<1x32xf32, #tpu.memory_space<vmem>>, vector<1x32xf32>
    %135 = vector.broadcast %134 : vector<1x32xf32> to vector<8x32xf32>
    %136 = arith.addf %133, %135 : vector<8x32xf32>
    %137 = arith.addf %87, %136 : vector<8x32xf32>
    %c0_56 = arith.constant 0 : index
    %c0_57 = arith.constant 0 : index
    %c0_58 = arith.constant 0 : index
    %138 = vector.load %arg12[%c0_56, %c0_57, %c0_58] : memref<1x8x32xf32, #tpu.memory_space<vmem>>, vector<1x8x32xf32>
    %139 = vector.shape_cast %138 : vector<1x8x32xf32> to vector<8x32xf32>
    %140 = vector.shape_cast %137 : vector<8x32xf32> to vector<1x8x32xf32>
    tpu.vector_store %arg12[%c0_56, %c0_57, %c0_58], %140 {strides = array<i32>} : memref<1x8x32xf32, #tpu.memory_space<vmem>>, vector<1x8x32xf32>,
    return
  }
  func.func @transform_0(%arg0: i32) -> (i32, i32, i32) {
    %c0_i32 = arith.constant 0 : i32
    %c0_i32_0 = arith.constant 0 : i32
    %c0_i32_1 = arith.constant 0 : i32
    return %arg0, %c0_i32, %c0_i32_0 : i32, i32, i32
  }
  func.func @transform_1(%arg0: i32) -> (i32, i32) {
    %c0_i32 = arith.constant 0 : i32
    %c0_i32_0 = arith.constant 0 : i32
    %c0_i32_1 = arith.constant 0 : i32
    return %c0_i32, %c0_i32_0 : i32, i32
  }
  func.func @transform_2(%arg0: i32) -> (i32, i32) {
    %c0_i32 = arith.constant 0 : i32
    %c0_i32_0 = arith.constant 0 : i32
    %c0_i32_1 = arith.constant 0 : i32
    return %c0_i32, %c0_i32_0 : i32, i32
  }
  func.func @transform_3(%arg0: i32) -> (i32, i32, i32) {
    %c0_i32 = arith.constant 0 : i32
    %c0_i32_0 = arith.constant 0 : i32
    %c0_i32_1 = arith.constant 0 : i32
    %c0_i32_2 = arith.constant 0 : i32
    return %c0_i32, %c0_i32_0, %c0_i32_1 : i32, i32, i32
  }
  func.func @transform_4(%arg0: i32) -> (i32, i32, i32) {
    %c0_i32 = arith.constant 0 : i32
    %c0_i32_0 = arith.constant 0 : i32
    %c0_i32_1 = arith.constant 0 : i32
    %c0_i32_2 = arith.constant 0 : i32
    return %c0_i32, %c0_i32_0, %c0_i32_1 : i32, i32, i32
  }
  func.func @transform_5(%arg0: i32) -> (i32, i32) {
    %c0_i32 = arith.constant 0 : i32
    %c0_i32_0 = arith.constant 0 : i32
    %c0_i32_1 = arith.constant 0 : i32
    return %c0_i32, %c0_i32_0 : i32, i32
  }
  func.func @transform_6(%arg0: i32) -> (i32, i32) {
    %c0_i32 = arith.constant 0 : i32
    %c0_i32_0 = arith.constant 0 : i32
    %c0_i32_1 = arith.constant 0 : i32
    return %c0_i32, %c0_i32_0 : i32, i32
  }
  func.func @transform_7(%arg0: i32) -> (i32, i32) {
    %c0_i32 = arith.constant 0 : i32
    %c0_i32_0 = arith.constant 0 : i32
    %c0_i32_1 = arith.constant 0 : i32
    return %c0_i32, %c0_i32_0 : i32, i32
  }
  func.func @transform_8(%arg0: i32) -> (i32, i32) {
    %c0_i32 = arith.constant 0 : i32
    %c0_i32_0 = arith.constant 0 : i32
    %c0_i32_1 = arith.constant 0 : i32
    return %c0_i32, %c0_i32_0 : i32, i32
  }
  func.func @transform_9(%arg0: i32) -> (i32, i32) {
    %c0_i32 = arith.constant 0 : i32
    %c0_i32_0 = arith.constant 0 : i32
    %c0_i32_1 = arith.constant 0 : i32
    return %c0_i32, %c0_i32_0 : i32, i32
  }
  func.func @transform_10(%arg0: i32) -> (i32, i32) {
    %c0_i32 = arith.constant 0 : i32
    %c0_i32_0 = arith.constant 0 : i32
    %c0_i32_1 = arith.constant 0 : i32
    return %c0_i32, %c0_i32_0 : i32, i32
  }
  func.func @transform_11(%arg0: i32) -> (i32, i32, i32) {
    %c0_i32 = arith.constant 0 : i32
    %c0_i32_0 = arith.constant 0 : i32
    %c0_i32_1 = arith.constant 0 : i32
    return %arg0, %c0_i32, %c0_i32_0 : i32, i32, i32
  }
}

</mosaic_0001>

<bundles_post_ra>
// kernel: tpu_custom_call.1
= control target key start
LH: loop header
LB: loop body
LE: loop exit
PB: predicated region body
PF: predicated region fallthrough
CT: control target
= control target key end

     0   :  { %s1615_s0 = inlined_call_operand.vmem [shape: f32[2,8,32], index: 0, kind: input, shape index: {}]   ;;  %s1616_s1 = inlined_call_operand.vmem [shape: f32[1,32], index: 1, kind: input, shape index: {}]   ;;  %s1617_s2 = inlined_call_operand.vmem [shape: f32[1,32], index: 2, kind: input, shape index: {}]   ;;  %s1618_s3 = inlined_call_operand.vmem [shape: bf16[2,16,48], index: 3, kind: input, shape index: {}]   ;;  %s1619_s4 = inlined_call_operand.vmem [shape: f32[2,1,48], index: 4, kind: input, shape index: {}]   ;;  %s1620_s5 = inlined_call_operand.vmem [shape: f32[1,32], index: 5, kind: input, shape index: {}]   ;;  %s1621_s6 = inlined_call_operand.vmem [shape: f32[1,32], index: 6, kind: input, shape index: {}]   ;;  %s1622_s7 = inlined_call_operand.vmem [shape: bf16[32,128], index: 7, kind: input, shape index: {}]   ;;  %s1623_s8 = inlined_call_operand.vmem [shape: f32[1,128], index: 8, kind: input, shape index: {}]   ;;  %s1624_s9 = inlined_call_operand.vmem [shape: bf16[128,32], index: 9, kind: input, shape index: {}]   ;;  %s1625_s10 = inlined_call_operand.vmem [shape: f32[1,32], index: 10, kind: input, shape index: {}]   ;;  %s1626_s11 = inlined_call_operand.hbm [shape: f32[2,8,32], index: 11, kind: output, shape index: {}]  }
   0x1   :  { %1627 = sst [smem:[#allocation5_spill]] %s1615_s0 }
   0x2   :  { %16 = vsyncpa [#allocation3], 0 }
   0x3   :  { %18 = vsyncpa [#allocation3 + $0x1], 0  ;;  %s1390_s17 = smov 0   ;;  %s1392_s18 = smov 0  }
   0x4   :  { %s1394_s19 = smov 0   ;;  %s1396_s20 = smov 0  }
   0x5 LB: > { %s1411_s21 = sadd.s32 4294967295, %s1322_s20   ;;  %s1062_s22 = sadd.s32 4294967294, %s1322_s20   ;;  %s1322_s20 = sphi %s1396_s20, %s1634_s20   ;;  %s1318_s19 = sphi %s1394_s19, %s1633_s19   ;;  %s1314_s18 = sphi %s1392_s18, %s1632_s18   ;;  %s1310_s17 = sphi %s1390_s17, %s1631_s17  }
   0x6   : > { %s1415_s23 = sadd.s32 1, %s1322_s20   ;;  %s267_s24 = sadd.s32 1, %s1318_s19 }
   0x7   : > { %s264_s25 = ssub.s32 %s1322_s20, %s1415_s23  ;;  %p277_p0 = scmp.ne.s32.totalorder %s1318_s19, %s1314_s18 }
   0x8   : > { %p265_p1 = scmp.eq.s32.totalorder %s264_s25, 0  ;;  %p278_p2 = scmp.eq.s32.totalorder %s1411_s21, 1 }
   0x9   : > { %p283_p3 = scmp.ne.s32.totalorder %s1314_s18, %s1310_s17  ;;  %p284_p4 = scmp.eq.s32.totalorder %s1062_s22, 1 }
   0xa   : > { %s1426_s26 = scalar_select %p265_p1, %s1318_s19, %s267_s24  }
   0xb   : > { %p1428_p5 = por %p278_p2, %p277_p0  ;;  %p1432_p6 = por %p284_p4, %p283_p3 }
   0xc   : > { %p1065_p7 = scmp.ge.s32.totalorder %s1322_s20, 1  ;;  %p339_p8 = scmp.lt.s32.totalorder %s1322_s20, 3 }
   0xe   : > { %p340_p9 = pnand %p1065_p7, %p339_p8 }
   0xf   : > { %p378_p10 = scmp.lt.s32.totalorder (!%p340_p9), %s1411_s21, 1  ;;  %vm384_vm0 = vcmask (!%p340_p9), 261120   ;;  %s1630_s0 = sld [smem:[#allocation5_spill]] (!%p340_p9)  ;;  %v1234_v7 = vld [vmem:[%s1618_s3] sm:$0xff] (!%p340_p9)   ;;  %v1324_v8 = vmov (!%p340_p9), 0.0   ;;  %vm1325_vm1 = vmmov (!%p340_p9), 0  }
  0x10   : > { %343 = sbr.rel (%p340_p9) target bundleno = 2864 (0xb30), region = 64  ;;  %1126 = vmatprep.subr.bf16.mxu0 (!%p340_p9), %v1324_v8  ;;  %1128 = vmatprep.mubr.msk.bf16.mxu0 (!%p340_p9), %vm1325_vm1, %v1324_v8  ;;  %v1068_v13 = vld [vmem:[%s1616_s1] ss:$0 sm:$0xff] (!%p340_p9)  ;;  %vm431_vm2 = vcmask (!%p340_p9), 130048   ;;  %v1235_v19 = vld [vmem:[%s1618_s3 + $0x8] sm:$0xff] (!%p340_p9)   ;;  %s1326_s15 = smov (!%p340_p9), 112  }
  0x11   : > { %1127 = vmatpush3.bf16.msra.mxu0 (!%p340_p9), %v1234_v7  ;;  %1144 = vmatprep.subr.bf16.mxu1 (!%p340_p9), %v1324_v8  ;;  %v1069_v15 = vld [vmem:[%s1617_s2] ss:$0 sm:$0xff] (!%p340_p9)  ;;  %vm527_vm3 = vcmask (!%p340_p9), 64512   ;;  %v1078_v41 = vld [vmem:[%s1619_s4 + $0x1] ss:$0 sm:$0xff] (!%p340_p9)  ;;  %s1327_s24 = smov (!%p340_p9), 96  }
  0x12   : > { %1132 = vmatprep.subr.bf16.mxu0 (!%p340_p9), %v1324_v8  ;;  %1146 = vmatprep.mubr.msk.bf16.mxu1 (!%p340_p9), %vm1325_vm1, %v1324_v8  ;;  %v1070_v20 = vld [vmem:[%s1619_s4] ss:$0 sm:$0xff] (!%p340_p9)  ;;  %vm545_vm4 = vcmask (!%p340_p9), 1043456   ;;  %s1328_s25 = smov (!%p340_p9), 16   ;;  %s375_s16 = sand.u32 (!%p340_p9), 1, %s1314_s18  }
  0x13   : > { %1145 = vmatpush3.bf16.msra.mxu1 (!%p340_p9), %v1235_v19  ;;  %s1066_s22 = sshll.u32 (!%p340_p9), %s375_s16, 3 }
  0x14   : > { %1156 = vmatprep.subr.bf16.mxu1 (!%p340_p9), %v1324_v8 }
  0x17   : > { %s379_s29 = scalar_select %p378_p10, %s1411_s21, 1 }
  0x19   : > { %s1067_s30 = sshll.u32 %s379_s29, 3  ;;  %s1099_s29 = sshll.u32 %s1411_s21, 7 }
  0x1a   : > { %s381_s14 = scalar_lea.vmem %s1630_s0, %s1067_s30  ;;  %s377_s30 = scalar_lea.vmem [#allocation2], %s1066_s22 }
  0x1b   : > { %v1443_v0 = vld [vmem:[%s381_s14] sm:$0xff]  ;;  %s1003_s12 = sshll.u32 %s377_s30, 4  ;;  %s990_s21 = scalar_lea.sflag [#allocation3], %s375_s16  ;;  %s1574_s12 = int_to_ptr.vmem [resolvable:$true] %s1003_s12 }
  0x1c   : > { %v385_v1 = vsel %vm384_vm0, %v1443_v0, 0.0  ;;  %s1260_s22 = scalar_lea.vmem %s1574_s12, 128 }
  0x1d   : > { %386 = vadd.xlane.f32.xlu0 %v385_v1  ;;  %p1261_p11 = scmp.ne.s32.totalorder %s1574_s12, %s1260_s22 }
  0x1f   : > { %p1262_p12 = pnand %p1261_p11, %p1428_p5 }
  0x21   : > { %p1263_p13 = pneg %p1262_p12 }
  0xaa   : > { %v387_v2 = vpop.xlane.xlu0 %386 }
  0xab   : > { %v389_v3 = vmul.f32 0.03125, %v387_v2 }
  0xad   : > { %v390_v4 = vsub.f32 %v1443_v0, %v389_v3 }
  0xaf   : > { %v391_v5 = vmul.f32 %v390_v4, %v390_v4 }
  0xb1   : > { %v392_v6 = vsel %vm384_vm0, %v391_v5, 0.0 }
  0xb2   : > { %393 = vadd.xlane.f32.xlu0 %v392_v6 }
 0x13f   : > { %v394_v9 = vpop.xlane.xlu0 %393 }
 0x140   : > { %v395_v10 = vmul.f32 0.03125, %v394_v9 }
 0x142   : > { %v396_v11 = vadd.f32 1e-05, %v395_v10 }
 0x144   : > { %1246 = vrsqrt.f32 %v396_v11 }
 0x14e   : > { %v1247_v12 = vpop.eup %1246 }
 0x14f   : > { %v398_v14 = vmul.f32 %v1247_v12, %v390_v4 }
 0x151   : > { %v406_v16 = vmul.f32 %v1068_v13, %v398_v14 }
 0x153   : > { %v414_v17 = vadd.f32 %v1069_v15, %v406_v16 }
 0x155   : > { %v415_v18 = vpack.c.bf16 %v414_v17, %v414_v17 }
 0x157   : > { %1129 = vmatmul.mubr.msk.bf16.vlgmr.msra.gmra.mrb[0].mxu0 %vm431_vm2, %v415_v18 }
 0x158   : > { %1134 = vmatprep.mubr.msk.bf16.mxu0 %vm1325_vm1, %v1324_v8 }
 0x22a   : > { %v469_v21 = vpop.f32.mrb[0].mxu0 }
 0x22b   : > { %v470_v22 = vadd.f32 %v1070_v20, %v469_v21  ;;  %v1130_v23 = vpop.f32.mrb[1].mxu0 }
 0x22c   : > { %v472_v24 = vpop.f32.mrb[2].mxu0 }
 0x22d   : > { %v1131_v25 = vpop.f32.mrb[3].mxu0  ;;  %v477_v26 = vpack.c.bf16 %v470_v22, %v470_v22  ;;  %v475_v29 = vmul.f32 0.25, %v470_v22 }
 0x22f   : > { %479 = vrot.lane.b32.xlu1 %v477_v26, %s1326_s15  ;;  %v476_v31 = vpack.c.bf16 %v475_v29, %v475_v29 }
 0x233   : > { %601 = vrot.lane.b32.xlu1 %v415_v18, %s1326_s15 }
 0x2a1   : > { %v480_v27 = vpop.permute.xlu1 %479 }
 0x2a2   : > { %v485_v28 = vsel %vm431_vm2, %v480_v27, 0 }
 0x2a3   : > { %1133 = vmatpush3.bf16.xpose.msra.mxu0 %v485_v28 }
 0x2a4   : > { %1138 = vmatprep.subr.bf16.mxu0 %v1324_v8 }
 0x2a5   : > { %v602_v30 = vpop.permute.xlu1 %601 }
 0x2a6   : > { %1147 = vmatmul.mubr.msk.bf16.vlgmr.msra.gmra.mrb[0].mxu1 %vm431_vm2, %v602_v30  ;;  %v1236_v30 = vld [vmem:[%s1622_s7] sm:$0xff]  }
 0x2a7   : > { %1158 = vmatprep.mubr.msk.bf16.mxu1 %vm1325_vm1, %v1324_v8 }
 0x2aa   : > { %1135 = vmatmul.mubr.msk.bf16.vlgmr.msra.gmra.mrb[4].mxu0 %vm431_vm2, %v476_v31 }
 0x2ab   : > { %1140 = vmatprep.mubr.msk.bf16.mxu0 %vm1325_vm1, %v1324_v8 }
 0x379   : > { %v646_v32 = vpop.f32.mrb[0].mxu1 }
 0x37a   : > { %v1148_v33 = vpop.f32.mrb[1].mxu1  ;;  %v647_v42 = vadd.f32 %v1078_v41, %v646_v32  ;;  %v1238_v41 = vld [vmem:[%s1624_s9] sm:$0xff]  }
 0x37b   : > { %v649_v34 = vpop.f32.mrb[2].mxu1 }
 0x37c   : > { %v1149_v35 = vpop.f32.mrb[3].mxu1  ;;  %v654_v43 = vpack.c.bf16 %v647_v42, %v647_v42  ;;  %v652_v57 = vmul.f32 0.25, %v647_v42  ;;  %v1239_v42 = vld [vmem:[%s1624_s9 + $0x8] sm:$0xff]  }
 0x37d   : > { %v521_v36 = vpop.f32.mrb[4].mxu0  ;;  %v1083_v35 = vld [vmem:[%s1620_s5] ss:$0 sm:$0xff] }
 0x37e   : > { %v1136_v37 = vpop.f32.mrb[5].mxu0  ;;  %v528_v38 = vsel %vm527_vm3, %v521_v36, -inf  ;;  %v653_v58 = vpack.c.bf16 %v652_v57, %v652_v57 }
 0x37f   : > { %529 = vmax.xlane.f32.xlu0 %v528_v38  ;;  %v524_v39 = vpop.f32.mrb[6].mxu0  ;;  %v1084_v37 = vld [vmem:[%s1621_s6] ss:$0 sm:$0xff] }
 0x380   : > { %v1137_v40 = vpop.f32.mrb[7].mxu0 }
 0x395   : > { %540 = vrot.lane.b32.xlu0 %v477_v26, %s1327_s24 }
 0x399   : > { %656 = vrot.lane.b32.xlu0 %v654_v43, %s1326_s15  ;;  %s1572_s15 = scalar_lea.hbm %s1626_s11, %s1099_s29 }
 0x40c   : > { %v530_v44 = vpop.xlane.xlu0 %529 }
 0x40d   : > { %v531_v45 = vsub.f32 %v521_v36, %v530_v44  ;;  %v1241_v44 = vld [vmem:[%s1624_s9 + $0x18] sm:$0xff]  }
 0x40f   : > { %v532_v46 = vmul.f32 1.442695, %v531_v45  ;;  %v1242_v45 = vld [vmem:[%s1624_s9 + $0x20] sm:$0xff]  }
 0x410   : > { %v541_v47 = vpop.permute.xlu0 %540 }
 0x411   : > { %1248 = vpow2.f32 %v532_v46  ;;  %v547_v48 = vsel %vm545_vm4, %v541_v47, 0  ;;  %v1243_v46 = vld [vmem:[%s1624_s9 + $0x28] sm:$0xff]   ;;  %v1244_v47 = vld [vmem:[%s1624_s9 + $0x30] sm:$0xff]  }
 0x412   : > { %1139 = vmatpush3.bf16.msra.mxu0 %v547_v48  ;;  %v1245_v48 = vld [vmem:[%s1624_s9 + $0x38] sm:$0xff]  }
 0x413   : > { %1150 = vmatprep.subr.bf16.mxu0 %v1324_v8 }
 0x414   : > { %v657_v54 = vpop.permute.xlu0 %656 }
 0x415   : > { %v662_v56 = vsel %vm431_vm2, %v657_v54, 0 }
 0x41b   : > { %v1249_v49 = vpop.eup %1248 }
 0x41c   : > { %v534_v50 = vsel %vm527_vm3, %v1249_v49, 0.0 }
 0x41d   : > { %535 = vadd.xlane.f32.xlu1 %v534_v50 }
 0x4aa   : > { %v536_v51 = vpop.xlane.xlu1 %535 }
 0x4ab   : > { %1250 = vrcp.f32 %v536_v51 }
 0x4b5   : > { %v1251_v52 = vpop.eup %1250 }
 0x4b6   : > { %v538_v53 = vmul.f32 %v1251_v52, %v1249_v49  ;;  %v1085_v49 = vld [vmem:[%s1623_s8] ss:$0 sm:$0xff] }
 0x4b8   : > { %v539_v55 = vpack.c.bf16 %v538_v53, %v538_v53 }
 0x4ba   : > { %1141 = vmatmul.mubr.msk.bf16.vlgmr.msra.gmra.mrb[8].mxu0 %vm527_vm3, %v539_v55 }
 0x4bb   : > { %1151 = vmatpush3.bf16.xpose.msra.mxu0 %v662_v56  ;;  %1152 = vmatprep.mubr.msk.bf16.mxu0 %vm1325_vm1, %v1324_v8 }
 0x4bc   : > { %1162 = vmatprep.subr.bf16.mxu0 %v1324_v8 }
 0x4c2   : > { %1153 = vmatmul.mubr.msk.bf16.vlgmr.msra.gmra.mrb[12].mxu0 %vm431_vm2, %v653_v58 }
 0x4c3   : > { %1166 = vmatprep.mubr.msk.bf16.mxu0 %vm1325_vm1, %v1324_v8  ;;  %1163 = vmatpush3.bf16.msra.mxu0 %v1236_v30 }
 0x4c4   : > { %1164 = vmatprep.subr.bf16.mxu0 %v1324_v8 }
 0x58d   : > { %v583_v59 = vpop.f32.mrb[8].mxu0 }
 0x58e   : > { %v1142_v60 = vpop.f32.mrb[9].mxu0 }
 0x58f   : > { %v586_v61 = vpop.f32.mrb[10].mxu0 }
 0x590   : > { %v1143_v62 = vpop.f32.mrb[11].mxu0 }
 0x595   : > { %v698_v63 = vpop.f32.mrb[12].mxu0 }
 0x596   : > { %v1154_v1 = vpop.f32.mrb[13].mxu0  ;;  %v704_v2 = vsel %vm527_vm3, %v698_v63, -inf }
 0x597   : > { %705 = vmax.xlane.f32.xlu0 %v704_v2  ;;  %v701_v3 = vpop.f32.mrb[14].mxu0  ;;  %v1089_v1 = vld [vmem:[%s1625_s10] ss:$0 sm:$0xff] }
 0x598   : > { %v1155_v4 = vpop.f32.mrb[15].mxu0 }
 0x624   : > { %v706_v5 = vpop.xlane.xlu0 %705 }
 0x625   : > { %v707_v6 = vsub.f32 %v698_v63, %v706_v5 }
 0x627   : > { %v708_v7 = vmul.f32 1.442695, %v707_v6 }
 0x629   : > { %1252 = vpow2.f32 %v708_v7 }
 0x633   : > { %v1253_v9 = vpop.eup %1252 }
 0x634   : > { %v710_v10 = vsel %vm527_vm3, %v1253_v9, 0.0 }
 0x635   : > { %711 = vadd.xlane.f32.xlu1 %v710_v10 }
 0x646   : > { %716 = vrot.lane.b32.xlu1 %v654_v43, %s1327_s24  ;;  %v1240_v43 = vld [vmem:[%s1624_s9 + $0x10] sm:$0xff]   ;;  %s1329_s24 = smov [#allocation2]  }
 0x6c2   : > { %v712_v11 = vpop.xlane.xlu1 %711 }
 0x6c3   : > { %1254 = vrcp.f32 %v712_v11 }
 0x6c6   : > { %v717_v12 = vpop.permute.xlu1 %716 }
 0x6c7   : > { %v722_v13 = vsel %vm545_vm4, %v717_v12, 0 }
 0x6c8   : > { %1157 = vmatpush3.bf16.msra.mxu1 %v722_v13 }
 0x6c9   : > { %1170 = vmatprep.subr.bf16.mxu1 %v1324_v8 }
 0x6cd   : > { %v1255_v14 = vpop.eup %1254 }
 0x6ce   : > { %v714_v15 = vmul.f32 %v1255_v14, %v1253_v9 }
 0x6d0   : > { %v715_v16 = vpack.c.bf16 %v714_v15, %v714_v15 }
 0x6d2   : > { %1159 = vmatmul.mubr.msk.bf16.vlgmr.msra.gmra.mrb[4].mxu1 %vm527_vm3, %v715_v16 }
 0x6d3   : > { %1186 = vmatprep.mubr.msk.bf16.mxu1 %vm1325_vm1, %v1324_v8  ;;  %1171 = vmatpush3.bf16.msra.mxu1 %v1238_v41 }
 0x6d4   : > { %1172 = vmatprep.subr.bf16.mxu1 %v1324_v8 }
 0x6d7   : > { %1173 = vmatpush3.bf16.msra.mxu1 %v1239_v42 }
 0x6d8   : > { %1174 = vmatprep.subr.bf16.mxu1 %v1324_v8 }
 0x6db   : > { %1175 = vmatpush3.bf16.msra.mxu1 %v1240_v43 }
 0x6dc   : > { %1176 = vmatprep.subr.bf16.mxu1 %v1324_v8 }
 0x6df   : > { %1177 = vmatpush3.bf16.msra.mxu1 %v1241_v44 }
 0x6e0   : > { %1178 = vmatprep.subr.bf16.mxu1 %v1324_v8 }
 0x6e3   : > { %1179 = vmatpush3.bf16.msra.mxu1 %v1242_v45 }
 0x6e4   : > { %1180 = vmatprep.subr.bf16.mxu1 %v1324_v8 }
 0x6e7   : > { %1181 = vmatpush3.bf16.msra.mxu1 %v1243_v46 }
 0x6e8   : > { %1182 = vmatprep.subr.bf16.mxu1 %v1324_v8 }
 0x6eb   : > { %1183 = vmatpush3.bf16.msra.mxu1 %v1244_v47 }
 0x6ec   : > { %1184 = vmatprep.subr.bf16.mxu1 %v1324_v8 }
 0x6ef   : > { %1185 = vmatpush3.bf16.msra.mxu1 %v1245_v48 }
 0x7a5   : > { %v758_v17 = vpop.f32.mrb[4].mxu1 }
 0x7a6   : > { %765 = vrot.lane.b32.xlu1 %v758_v17, %s1328_s25  ;;  %v1160_v18 = vpop.f32.mrb[5].mxu1  ;;  %s1264_s25 = sshll.u32 %s1329_s24, 4  ;;  %s1265_s25 = int_to_ptr.vmem [resolvable:$false] %s1264_s25 }
 0x7a7   : > { %v761_v19 = vpop.f32.mrb[6].mxu1  ;;  %s1266_s0 = scalar_lea.vmem %s1265_s25, 256  ;;  %p1267_p0 = scmp.lt.s32.totalorder %s1574_s12, %s1265_s25 }
 0x7a8   : > { %v1161_v20 = vpop.f32.mrb[7].mxu1  ;;  %p1268_p1 = scmp.lt.s32.totalorder %s1266_s0, %s1260_s22 }
 0x7aa   : > { %p1269_p2 = por %p1268_p1, %p1267_p0 }
 0x7ac   : > { %p1270_p3 = pnand %p1269_p2, %p1263_p13 }
 0x818   : > { %v766_v21 = vpop.permute.xlu1 %765 }
 0x819   : > { %v768_v22 = vsel %vm431_vm2, %v583_v59, %v766_v21 }
 0x81a   : > { %v1509_v23 = vadd.f32 %v768_v22, %v1443_v0  ;;  %v1237_v0 = vld [vmem:[%s1622_s7 + $0x8] sm:$0xff]  }
 0x81b   : > { %1165 = vmatpush3.bf16.msra.mxu0 %v1237_v0 }
 0x81c   : > { %v770_v24 = vsel %vm384_vm0, %v1509_v23, 0.0 }
 0x81d   : > { %771 = vadd.xlane.f32.xlu0 %v770_v24 }
 0x8aa   : > { %v772_v25 = vpop.xlane.xlu0 %771 }
 0x8ab   : > { %v773_v26 = vmul.f32 0.03125, %v772_v25 }
 0x8ad   : > { %v774_v27 = vsub.f32 %v1509_v23, %v773_v26 }
 0x8af   : > { %v775_v28 = vmul.f32 %v774_v27, %v774_v27 }
 0x8b1   : > { %v776_v29 = vsel %vm384_vm0, %v775_v28, 0.0 }
 0x8b2   : > { %777 = vadd.xlane.f32.xlu1 %v776_v29 }
 0x93f   : > { %v778_v31 = vpop.xlane.xlu1 %777 }
 0x940   : > { %v779_v32 = vmul.f32 0.03125, %v778_v31 }
 0x942   : > { %v780_v33 = vadd.f32 1e-05, %v779_v32 }
 0x944   : > { %1256 = vrsqrt.f32 %v780_v33 }
 0x94e   : > { %v1257_v34 = vpop.eup %1256 }
 0x94f   : > { %v782_v36 = vmul.f32 %v1257_v34, %v774_v27 }
 0x951   : > { %v790_v38 = vmul.f32 %v1083_v35, %v782_v36 }
 0x953   : > { %v798_v39 = vadd.f32 %v1084_v37, %v790_v38 }
 0x955   : > { %v799_v40 = vpack.c.bf16 %v798_v39, %v798_v39 }
 0x957   : > { %1167 = vmatmul.mubr.msk.bf16.vlgmr.msra.gmra.mrb[16].mxu0 %vm384_vm0, %v799_v40 }
 0xa2a   : > { %v860_v50 = vpop.f32.mrb[16].mxu0 }
 0xa2b   : > { %v861_v51 = vadd.f32 %v1085_v49, %v860_v50  ;;  %v1168_v52 = vpop.f32.mrb[17].mxu0 }
 0xa2c   : > { %v863_v53 = vpop.f32.mrb[18].mxu0 }
 0xa2d   : > { %v866_v54 = vmul.f32 %v861_v51, %v861_v51  ;;  %v1169_v55 = vpop.f32.mrb[19].mxu0 }
 0xa2f   : > { %v867_v56 = vmul.f32 %v866_v54, %v861_v51 }
 0xa31   : > { %v868_v57 = vmul.f32 0.044715, %v867_v56 }
 0xa33   : > { %v869_v58 = vadd.f32 %v868_v57, %v861_v51 }
 0xa35   : > { %v870_v59 = vmul.f32 0.7978846, %v869_v58 }
 0xa37   : > { %1258 = vtanh.f32 %v870_v59 }
 0xa41   : > { %v1259_v60 = vpop.eup %1258 }
 0xa42   : > { %v872_v8 = vadd.f32 1.0, %v1259_v60 }
 0xa44   : > { %v873_v61 = vmul.f32 0.5, %v872_v8 }
 0xa46   : > { %v874_v62 = vmul.f32 %v873_v61, %v861_v51 }
 0xa48   : > { %v875_v63 = vpack.c.bf16 %v874_v62, %v874_v62 }
 0xa4a   : > { %1187 = vmatmul.mubr.bf16.vlgmr.msra.gmra.mrb[8].mxu1 %v875_v63 }
 0xb1d   : > { %v981_v2 = vpop.f32.mrb[8].mxu1 }
 0xb1e   : > { %v982_v3 = vadd.f32 %v1089_v1, %v981_v2  ;;  %v1188_v4 = vpop.f32.mrb[9].mxu1 }
 0xb1f   : > { %v984_v5 = vpop.f32.mrb[10].mxu1 }
 0xb20   : > { %v987_v6 = vadd.f32 %v982_v3, %v1509_v23  ;;  %v1189_v7 = vpop.f32.mrb[11].mxu1 }
 0xb22   : > { %988 = vst.msk [vmem:[%s377_s30] sm:$0xff] %vm384_vm0, %v987_v6 }
 0xb23   : > { %1273 = shalt.err (!%p1270_p3)
}
 0xb24   : > { %s1274_s16 = scalar_lea.hbm %s1572_s15, 128  ;;  %s1278_s13 = scalar_lea.hbm %s1626_s11, 256 }
 0xb25   : > { %p1275_p4 = scmp.ne.s32.totalorder %s1572_s15, %s1274_s16  ;;  %p1279_p9 = scmp.lt.u32.totalorder %s1572_s15, %s1626_s11 }
 0xb26   : > { %p1280_p10 = scmp.lt.u32.totalorder %s1278_s13, %s1274_s16  ;;  %p1282_p12 = scmp.lt.u32.totalorder %s1274_s16, %s1572_s15 }
 0xb27   : > { %p1276_p7 = pnand %p1275_p4, %p1428_p5 }
 0xb28   : > { %p1281_p11 = por %p1280_p10, %p1279_p9 }
 0xb29   : > { %p1277_p8 = pneg %p1276_p7 }
 0xb2a   : > { %p1283_p13 = por %p1282_p12, %p1281_p11 }
 0xb2c   : > { %p1284_p0 = pnand %p1283_p13, %p1277_p8 }
 0xb2e   : > { %1287 = shalt.err (!%p1284_p0)
}
 0xb2f   : > { %1190 = dma.vmem_to_hbm [thread:$0]  (%p1428_p5), %s1574_s12, 128, %s1572_s15, %s990_s21  }
 0xb30 PF: > { %p1196_p1 = scmp.ge.s32.totalorder %s1322_s20, 2  ;;  %s1015_s0 = sand.u32 1, %s1310_s17  }
 0xb31   : > { %s1016_s22 = scalar_lea.sflag [#allocation3], %s1015_s0 }
 0xb32   : > { %p1193_p2 = pnand %p1196_p1, %p1432_p6 }
 0xb34   : > { %1305 = dma.done.wait (!%p1193_p2), %s1016_s22, 128  }
 0xb35   : > { %1307 = vsyncadd (!%p1193_p2), %s1016_s22, 4294967168  ;;  %p21_p3 = scmp.ge.s32.totalorder %s1415_s23, 4   ;;  %s1631_s17 = smov %s1314_s18 }
 0xb36   : > { %s1632_s18 = smov %s1318_s19  ;;  %s1633_s19 = smov %s1426_s26 }
 0xb37   : > { %s1634_s20 = smov %s1415_s23  ;;  %23 = sbr.rel (!%p21_p3) target bundleno = 5 (0x5), region = 101 }
 0xb3e   :  { %1021 = vsyncpa [#allocation3], 1 }
 0xb3f   :  { %1023 = vsyncpa [#allocation3 + $0x1], 1 }

// kernel: tpu_custom_call.1
= control target key start
LH: loop header
LB: loop body
LE: loop exit
PB: predicated region body
PF: predicated region fallthrough
CT: control target
= control target key end

     0   :  { %s1615_s0 = inlined_call_operand.vmem [shape: f32[2,8,32], index: 0, kind: input, shape index: {}]   ;;  %s1616_s1 = inlined_call_operand.vmem [shape: f32[1,32], index: 1, kind: input, shape index: {}]   ;;  %s1617_s2 = inlined_call_operand.vmem [shape: f32[1,32], index: 2, kind: input, shape index: {}]   ;;  %s1618_s3 = inlined_call_operand.vmem [shape: bf16[2,16,48], index: 3, kind: input, shape index: {}]   ;;  %s1619_s4 = inlined_call_operand.vmem [shape: f32[2,1,48], index: 4, kind: input, shape index: {}]   ;;  %s1620_s5 = inlined_call_operand.vmem [shape: f32[1,32], index: 5, kind: input, shape index: {}]   ;;  %s1621_s6 = inlined_call_operand.vmem [shape: f32[1,32], index: 6, kind: input, shape index: {}]   ;;  %s1622_s7 = inlined_call_operand.vmem [shape: bf16[32,128], index: 7, kind: input, shape index: {}]   ;;  %s1623_s8 = inlined_call_operand.vmem [shape: f32[1,128], index: 8, kind: input, shape index: {}]   ;;  %s1624_s9 = inlined_call_operand.vmem [shape: bf16[128,32], index: 9, kind: input, shape index: {}]   ;;  %s1625_s10 = inlined_call_operand.vmem [shape: f32[1,32], index: 10, kind: input, shape index: {}]   ;;  %s1626_s11 = inlined_call_operand.hbm [shape: f32[2,8,32], index: 11, kind: output, shape index: {}]  }
   0x1   :  { %1627 = sst [smem:[#allocation5_spill]] %s1615_s0 }
   0x2   :  { %16 = vsyncpa [#allocation3], 0 }
   0x3   :  { %18 = vsyncpa [#allocation3 + $0x1], 0  ;;  %s1390_s17 = smov 0   ;;  %s1392_s18 = smov 0  }
   0x4   :  { %s1394_s19 = smov 0   ;;  %s1396_s20 = smov 0  }
   0x5 LB: > { %s1411_s21 = sadd.s32 4294967295, %s1322_s20   ;;  %s1062_s22 = sadd.s32 4294967294, %s1322_s20   ;;  %s1322_s20 = sphi %s1396_s20, %s1634_s20   ;;  %s1318_s19 = sphi %s1394_s19, %s1633_s19   ;;  %s1314_s18 = sphi %s1392_s18, %s1632_s18   ;;  %s1310_s17 = sphi %s1390_s17, %s1631_s17  }
   0x6   : > { %s1415_s23 = sadd.s32 1, %s1322_s20   ;;  %s267_s24 = sadd.s32 1, %s1318_s19 }
   0x7   : > { %s264_s25 = ssub.s32 %s1322_s20, %s1415_s23  ;;  %p277_p0 = scmp.ne.s32.totalorder %s1318_s19, %s1314_s18 }
   0x8   : > { %p265_p1 = scmp.eq.s32.totalorder %s264_s25, 0  ;;  %p278_p2 = scmp.eq.s32.totalorder %s1411_s21, 1 }
   0x9   : > { %p283_p3 = scmp.ne.s32.totalorder %s1314_s18, %s1310_s17  ;;  %p284_p4 = scmp.eq.s32.totalorder %s1062_s22, 1 }
   0xa   : > { %s1426_s26 = scalar_select %p265_p1, %s1318_s19, %s267_s24  }
   0xb   : > { %p1428_p5 = por %p278_p2, %p277_p0  ;;  %p1432_p6 = por %p284_p4, %p283_p3 }
   0xc   : > { %p1065_p7 = scmp.ge.s32.totalorder %s1322_s20, 1  ;;  %p339_p8 = scmp.lt.s32.totalorder %s1322_s20, 3 }
   0xe   : > { %p340_p9 = pnand %p1065_p7, %p339_p8 }
   0xf   : > { %p378_p10 = scmp.lt.s32.totalorder (!%p340_p9), %s1411_s21, 1  ;;  %vm384_vm0 = vcmask (!%p340_p9), 261120   ;;  %s1630_s0 = sld [smem:[#allocation5_spill]] (!%p340_p9)  ;;  %v1234_v7 = vld [vmem:[%s1618_s3] sm:$0xff] (!%p340_p9)   ;;  %v1324_v8 = vmov (!%p340_p9), 0.0   ;;  %vm1325_vm1 = vmmov (!%p340_p9), 0  }
  0x10   : > { %343 = sbr.rel (%p340_p9) target bundleno = 2864 (0xb30), region = 64  ;;  %1126 = vmatprep.subr.bf16.mxu0 (!%p340_p9), %v1324_v8  ;;  %1128 = vmatprep.mubr.msk.bf16.mxu0 (!%p340_p9), %vm1325_vm1, %v1324_v8  ;;  %v1068_v13 = vld [vmem:[%s1616_s1] ss:$0 sm:$0xff] (!%p340_p9)  ;;  %vm431_vm2 = vcmask (!%p340_p9), 130048   ;;  %v1235_v19 = vld [vmem:[%s1618_s3 + $0x8] sm:$0xff] (!%p340_p9)   ;;  %s1326_s15 = smov (!%p340_p9), 112  }
  0x11   : > { %1127 = vmatpush3.bf16.msra.mxu0 (!%p340_p9), %v1234_v7  ;;  %1144 = vmatprep.subr.bf16.mxu1 (!%p340_p9), %v1324_v8  ;;  %v1069_v15 = vld [vmem:[%s1617_s2] ss:$0 sm:$0xff] (!%p340_p9)  ;;  %vm527_vm3 = vcmask (!%p340_p9), 64512   ;;  %v1078_v41 = vld [vmem:[%s1619_s4 + $0x1] ss:$0 sm:$0xff] (!%p340_p9)  ;;  %s1327_s24 = smov (!%p340_p9), 96  }
  0x12   : > { %1132 = vmatprep.subr.bf16.mxu0 (!%p340_p9), %v1324_v8  ;;  %1146 = vmatprep.mubr.msk.bf16.mxu1 (!%p340_p9), %vm1325_vm1, %v1324_v8  ;;  %v1070_v20 = vld [vmem:[%s1619_s4] ss:$0 sm:$0xff] (!%p340_p9)  ;;  %vm545_vm4 = vcmask (!%p340_p9), 1043456   ;;  %s1328_s25 = smov (!%p340_p9), 16   ;;  %s375_s16 = sand.u32 (!%p340_p9), 1, %s1314_s18  }
  0x13   : > { %1145 = vmatpush3.bf16.msra.mxu1 (!%p340_p9), %v1235_v19  ;;  %s1066_s22 = sshll.u32 (!%p340_p9), %s375_s16, 3 }
  0x14   : > { %1156 = vmatprep.subr.bf16.mxu1 (!%p340_p9), %v1324_v8 }
  0x17   : > { %s379_s29 = scalar_select %p378_p10, %s1411_s21, 1 }
  0x19   : > { %s1067_s30 = sshll.u32 %s379_s29, 3  ;;  %s1099_s29 = sshll.u32 %s1411_s21, 7 }
  0x1a   : > { %s381_s14 = scalar_lea.vmem %s1630_s0, %s1067_s30  ;;  %s377_s30 = scalar_lea.vmem [#allocation2], %s1066_s22 }
  0x1b   : > { %v1443_v0 = vld [vmem:[%s381_s14] sm:$0xff]  ;;  %s1003_s12 = sshll.u32 %s377_s30, 4  ;;  %s990_s21 = scalar_lea.sflag [#allocation3], %s375_s16  ;;  %s1574_s12 = int_to_ptr.vmem [resolvable:$true] %s1003_s12 }
  0x1c   : > { %v385_v1 = vsel %vm384_vm0, %v1443_v0, 0.0  ;;  %s1260_s22 = scalar_lea.vmem %s1574_s12, 128 }
  0x1d   : > { %386 = vadd.xlane.f32.xlu0 %v385_v1  ;;  %p1261_p11 = scmp.ne.s32.totalorder %s1574_s12, %s1260_s22 }
  0x1f   : > { %p1262_p12 = pnand %p1261_p11, %p1428_p5 }
  0x21   : > { %p1263_p13 = pneg %p1262_p12 }
  0xaa   : > { %v387_v2 = vpop.xlane.xlu0 %386 }
  0xab   : > { %v389_v3 = vmul.f32 0.03125, %v387_v2 }
  0xad   : > { %v390_v4 = vsub.f32 %v1443_v0, %v389_v3 }
  0xaf   : > { %v391_v5 = vmul.f32 %v390_v4, %v390_v4 }
  0xb1   : > { %v392_v6 = vsel %vm384_vm0, %v391_v5, 0.0 }
  0xb2   : > { %393 = vadd.xlane.f32.xlu0 %v392_v6 }
 0x13f   : > { %v394_v9 = vpop.xlane.xlu0 %393 }
 0x140   : > { %v395_v10 = vmul.f32 0.03125, %v394_v9 }
 0x142   : > { %v396_v11 = vadd.f32 1e-05, %v395_v10 }
 0x144   : > { %1246 = vrsqrt.f32 %v396_v11 }
 0x14e   : > { %v1247_v12 = vpop.eup %1246 }
 0x14f   : > { %v398_v14 = vmul.f32 %v1247_v12, %v390_v4 }
 0x151   : > { %v406_v16 = vmul.f32 %v1068_v13, %v398_v14 }
 0x153   : > { %v414_v17 = vadd.f32 %v1069_v15, %v406_v16 }
 0x155   : > { %v415_v18 = vpack.c.bf16 %v414_v17, %v414_v17 }
 0x157   : > { %1129 = vmatmul.mubr.msk.bf16.vlgmr.msra.gmra.mrb[0].mxu0 %vm431_vm2, %v415_v18 }
 0x158   : > { %1134 = vmatprep.mubr.msk.bf16.mxu0 %vm1325_vm1, %v1324_v8 }
 0x22a   : > { %v469_v21 = vpop.f32.mrb[0].mxu0 }
 0x22b   : > { %v470_v22 = vadd.f32 %v1070_v20, %v469_v21  ;;  %v1130_v23 = vpop.f32.mrb[1].mxu0 }
 0x22c   : > { %v472_v24 = vpop.f32.mrb[2].mxu0 }
 0x22d   : > { %v1131_v25 = vpop.f32.mrb[3].mxu0  ;;  %v477_v26 = vpack.c.bf16 %v470_v22, %v470_v22  ;;  %v475_v29 = vmul.f32 0.25, %v470_v22 }
 0x22f   : > { %479 = vrot.lane.b32.xlu1 %v477_v26, %s1326_s15  ;;  %v476_v31 = vpack.c.bf16 %v475_v29, %v475_v29 }
 0x233   : > { %601 = vrot.lane.b32.xlu1 %v415_v18, %s1326_s15 }
 0x2a1   : > { %v480_v27 = vpop.permute.xlu1 %479 }
 0x2a2   : > { %v485_v28 = vsel %vm431_vm2, %v480_v27, 0 }
 0x2a3   : > { %1133 = vmatpush3.bf16.xpose.msra.mxu0 %v485_v28 }
 0x2a4   : > { %1138 = vmatprep.subr.bf16.mxu0 %v1324_v8 }
 0x2a5   : > { %v602_v30 = vpop.permute.xlu1 %601 }
 0x2a6   : > { %1147 = vmatmul.mubr.msk.bf16.vlgmr.msra.gmra.mrb[0].mxu1 %vm431_vm2, %v602_v30  ;;  %v1236_v30 = vld [vmem:[%s1622_s7] sm:$0xff]  }
 0x2a7   : > { %1158 = vmatprep.mubr.msk.bf16.mxu1 %vm1325_vm1, %v1324_v8 }
 0x2aa   : > { %1135 = vmatmul.mubr.msk.bf16.vlgmr.msra.gmra.mrb[4].mxu0 %vm431_vm2, %v476_v31 }
 0x2ab   : > { %1140 = vmatprep.mubr.msk.bf16.mxu0 %vm1325_vm1, %v1324_v8 }
 0x379   : > { %v646_v32 = vpop.f32.mrb[0].mxu1 }
 0x37a   : > { %v1148_v33 = vpop.f32.mrb[1].mxu1  ;;  %v647_v42 = vadd.f32 %v1078_v41, %v646_v32  ;;  %v1238_v41 = vld [vmem:[%s1624_s9] sm:$0xff]  }
 0x37b   : > { %v649_v34 = vpop.f32.mrb[2].mxu1 }
 0x37c   : > { %v1149_v35 = vpop.f32.mrb[3].mxu1  ;;  %v654_v43 = vpack.c.bf16 %v647_v42, %v647_v42  ;;  %v652_v57 = vmul.f32 0.25, %v647_v42  ;;  %v1239_v42 = vld [vmem:[%s1624_s9 + $0x8] sm:$0xff]  }
 0x37d   : > { %v521_v36 = vpop.f32.mrb[4].mxu0  ;;  %v1083_v35 = vld [vmem:[%s1620_s5] ss:$0 sm:$0xff] }
 0x37e   : > { %v1136_v37 = vpop.f32.mrb[5].mxu0  ;;  %v528_v38 = vsel %vm527_vm3, %v521_v36, -inf  ;;  %v653_v58 = vpack.c.bf16 %v652_v57, %v652_v57 }
 0x37f   : > { %529 = vmax.xlane.f32.xlu0 %v528_v38  ;;  %v524_v39 = vpop.f32.mrb[6].mxu0  ;;  %v1084_v37 = vld [vmem:[%s1621_s6] ss:$0 sm:$0xff] }
 0x380   : > { %v1137_v40 = vpop.f32.mrb[7].mxu0 }
 0x395   : > { %540 = vrot.lane.b32.xlu0 %v477_v26, %s1327_s24 }
 0x399   : > { %656 = vrot.lane.b32.xlu0 %v654_v43, %s1326_s15  ;;  %s1572_s15 = scalar_lea.hbm %s1626_s11, %s1099_s29 }
 0x40c   : > { %v530_v44 = vpop.xlane.xlu0 %529 }
 0x40d   : > { %v531_v45 = vsub.f32 %v521_v36, %v530_v44  ;;  %v1241_v44 = vld [vmem:[%s1624_s9 + $0x18] sm:$0xff]  }
 0x40f   : > { %v532_v46 = vmul.f32 1.442695, %v531_v45  ;;  %v1242_v45 = vld [vmem:[%s1624_s9 + $0x20] sm:$0xff]  }
 0x410   : > { %v541_v47 = vpop.permute.xlu0 %540 }
 0x411   : > { %1248 = vpow2.f32 %v532_v46  ;;  %v547_v48 = vsel %vm545_vm4, %v541_v47, 0  ;;  %v1243_v46 = vld [vmem:[%s1624_s9 + $0x28] sm:$0xff]   ;;  %v1244_v47 = vld [vmem:[%s1624_s9 + $0x30] sm:$0xff]  }
 0x412   : > { %1139 = vmatpush3.bf16.msra.mxu0 %v547_v48  ;;  %v1245_v48 = vld [vmem:[%s1624_s9 + $0x38] sm:$0xff]  }
 0x413   : > { %1150 = vmatprep.subr.bf16.mxu0 %v1324_v8 }
 0x414   : > { %v657_v54 = vpop.permute.xlu0 %656 }
 0x415   : > { %v662_v56 = vsel %vm431_vm2, %v657_v54, 0 }
 0x41b   : > { %v1249_v49 = vpop.eup %1248 }
 0x41c   : > { %v534_v50 = vsel %vm527_vm3, %v1249_v49, 0.0 }
 0x41d   : > { %535 = vadd.xlane.f32.xlu1 %v534_v50 }
 0x4aa   : > { %v536_v51 = vpop.xlane.xlu1 %535 }
 0x4ab   : > { %1250 = vrcp.f32 %v536_v51 }
 0x4b5   : > { %v1251_v52 = vpop.eup %1250 }
 0x4b6   : > { %v538_v53 = vmul.f32 %v1251_v52, %v1249_v49  ;;  %v1085_v49 = vld [vmem:[%s1623_s8] ss:$0 sm:$0xff] }
 0x4b8   : > { %v539_v55 = vpack.c.bf16 %v538_v53, %v538_v53 }
 0x4ba   : > { %1141 = vmatmul.mubr.msk.bf16.vlgmr.msra.gmra.mrb[8].mxu0 %vm527_vm3, %v539_v55 }
 0x4bb   : > { %1151 = vmatpush3.bf16.xpose.msra.mxu0 %v662_v56  ;;  %1152 = vmatprep.mubr.msk.bf16.mxu0 %vm1325_vm1, %v1324_v8 }
 0x4bc   : > { %1162 = vmatprep.subr.bf16.mxu0 %v1324_v8 }
 0x4c2   : > { %1153 = vmatmul.mubr.msk.bf16.vlgmr.msra.gmra.mrb[12].mxu0 %vm431_vm2, %v653_v58 }
 0x4c3   : > { %1166 = vmatprep.mubr.msk.bf16.mxu0 %vm1325_vm1, %v1324_v8  ;;  %1163 = vmatpush3.bf16.msra.mxu0 %v1236_v30 }
 0x4c4   : > { %1164 = vmatprep.subr.bf16.mxu0 %v1324_v8 }
 0x58d   : > { %v583_v59 = vpop.f32.mrb[8].mxu0 }
 0x58e   : > { %v1142_v60 = vpop.f32.mrb[9].mxu0 }
 0x58f   : > { %v586_v61 = vpop.f32.mrb[10].mxu0 }
 0x590   : > { %v1143_v62 = vpop.f32.mrb[11].mxu0 }
 0x595   : > { %v698_v63 = vpop.f32.mrb[12].mxu0 }
 0x596   : > { %v1154_v1 = vpop.f32.mrb[13].mxu0  ;;  %v704_v2 = vsel %vm527_vm3, %v698_v63, -inf }
 0x597   : > { %705 = vmax.xlane.f32.xlu0 %v704_v2  ;;  %v701_v3 = vpop.f32.mrb[14].mxu0  ;;  %v1089_v1 = vld [vmem:[%s1625_s10] ss:$0 sm:$0xff] }
 0x598   : > { %v1155_v4 = vpop.f32.mrb[15].mxu0 }
 0x624   : > { %v706_v5 = vpop.xlane.xlu0 %705 }
 0x625   : > { %v707_v6 = vsub.f32 %v698_v63, %v706_v5 }
 0x627   : > { %v708_v7 = vmul.f32 1.442695, %v707_v6 }
 0x629   : > { %1252 = vpow2.f32 %v708_v7 }
 0x633   : > { %v1253_v9 = vpop.eup %1252 }
 0x634   : > { %v710_v10 = vsel %vm527_vm3, %v1253_v9, 0.0 }
 0x635   : > { %711 = vadd.xlane.f32.xlu1 %v710_v10 }
 0x646   : > { %716 = vrot.lane.b32.xlu1 %v654_v43, %s1327_s24  ;;  %v1240_v43 = vld [vmem:[%s1624_s9 + $0x10] sm:$0xff]   ;;  %s1329_s24 = smov [#allocation2]  }
 0x6c2   : > { %v712_v11 = vpop.xlane.xlu1 %711 }
 0x6c3   : > { %1254 = vrcp.f32 %v712_v11 }
 0x6c6   : > { %v717_v12 = vpop.permute.xlu1 %716 }
 0x6c7   : > { %v722_v13 = vsel %vm545_vm4, %v717_v12, 0 }
 0x6c8   : > { %1157 = vmatpush3.bf16.msra.mxu1 %v722_v13 }
 0x6c9   : > { %1170 = vmatprep.subr.bf16.mxu1 %v1324_v8 }
 0x6cd   : > { %v1255_v14 = vpop.eup %1254 }
 0x6ce   : > { %v714_v15 = vmul.f32 %v1255_v14, %v1253_v9 }
 0x6d0   : > { %v715_v16 = vpack.c.bf16 %v714_v15, %v714_v15 }
 0x6d2   : > { %1159 = vmatmul.mubr.msk.bf16.vlgmr.msra.gmra.mrb[4].mxu1 %vm527_vm3, %v715_v16 }
 0x6d3   : > { %1186 = vmatprep.mubr.msk.bf16.mxu1 %vm1325_vm1, %v1324_v8  ;;  %1171 = vmatpush3.bf16.msra.mxu1 %v1238_v41 }
 0x6d4   : > { %1172 = vmatprep.subr.bf16.mxu1 %v1324_v8 }
 0x6d7   : > { %1173 = vmatpush3.bf16.msra.mxu1 %v1239_v42 }
 0x6d8   : > { %1174 = vmatprep.subr.bf16.mxu1 %v1324_v8 }
 0x6db   : > { %1175 = vmatpush3.bf16.msra.mxu1 %v1240_v43 }
 0x6dc   : > { %1176 = vmatprep.subr.bf16.mxu1 %v1324_v8 }
 0x6df   : > { %1177 = vmatpush3.bf16.msra.mxu1 %v1241_v44 }
 0x6e0   : > { %1178 = vmatprep.subr.bf16.mxu1 %v1324_v8 }
 0x6e3   : > { %1179 = vmatpush3.bf16.msra.mxu1 %v1242_v45 }
 0x6e4   : > { %1180 = vmatprep.subr.bf16.mxu1 %v1324_v8 }
 0x6e7   : > { %1181 = vmatpush3.bf16.msra.mxu1 %v1243_v46 }
 0x6e8   : > { %1182 = vmatprep.subr.bf16.mxu1 %v1324_v8 }
 0x6eb   : > { %1183 = vmatpush3.bf16.msra.mxu1 %v1244_v47 }
 0x6ec   : > { %1184 = vmatprep.subr.bf16.mxu1 %v1324_v8 }
 0x6ef   : > { %1185 = vmatpush3.bf16.msra.mxu1 %v1245_v48 }
 0x7a5   : > { %v758_v17 = vpop.f32.mrb[4].mxu1 }
 0x7a6   : > { %765 = vrot.lane.b32.xlu1 %v758_v17, %s1328_s25  ;;  %v1160_v18 = vpop.f32.mrb[5].mxu1  ;;  %s1264_s25 = sshll.u32 %s1329_s24, 4  ;;  %s1265_s25 = int_to_ptr.vmem [resolvable:$false] %s1264_s25 }
 0x7a7   : > { %v761_v19 = vpop.f32.mrb[6].mxu1  ;;  %s1266_s0 = scalar_lea.vmem %s1265_s25, 256  ;;  %p1267_p0 = scmp.lt.s32.totalorder %s1574_s12, %s1265_s25 }
 0x7a8   : > { %v1161_v20 = vpop.f32.mrb[7].mxu1  ;;  %p1268_p1 = scmp.lt.s32.totalorder %s1266_s0, %s1260_s22 }
 0x7aa   : > { %p1269_p2 = por %p1268_p1, %p1267_p0 }
 0x7ac   : > { %p1270_p3 = pnand %p1269_p2, %p1263_p13 }
 0x818   : > { %v766_v21 = vpop.permute.xlu1 %765 }
 0x819   : > { %v768_v22 = vsel %vm431_vm2, %v583_v59, %v766_v21 }
 0x81a   : > { %v1509_v23 = vadd.f32 %v768_v22, %v1443_v0  ;;  %v1237_v0 = vld [vmem:[%s1622_s7 + $0x8] sm:$0xff]  }
 0x81b   : > { %1165 = vmatpush3.bf16.msra.mxu0 %v1237_v0 }
 0x81c   : > { %v770_v24 = vsel %vm384_vm0, %v1509_v23, 0.0 }
 0x81d   : > { %771 = vadd.xlane.f32.xlu0 %v770_v24 }
 0x8aa   : > { %v772_v25 = vpop.xlane.xlu0 %771 }
 0x8ab   : > { %v773_v26 = vmul.f32 0.03125, %v772_v25 }
 0x8ad   : > { %v774_v27 = vsub.f32 %v1509_v23, %v773_v26 }
 0x8af   : > { %v775_v28 = vmul.f32 %v774_v27, %v774_v27 }
 0x8b1   : > { %v776_v29 = vsel %vm384_vm0, %v775_v28, 0.0 }
 0x8b2   : > { %777 = vadd.xlane.f32.xlu1 %v776_v29 }
 0x93f   : > { %v778_v31 = vpop.xlane.xlu1 %777 }
 0x940   : > { %v779_v32 = vmul.f32 0.03125, %v778_v31 }
 0x942   : > { %v780_v33 = vadd.f32 1e-05, %v779_v32 }
 0x944   : > { %1256 = vrsqrt.f32 %v780_v33 }
 0x94e   : > { %v1257_v34 = vpop.eup %1256 }
 0x94f   : > { %v782_v36 = vmul.f32 %v1257_v34, %v774_v27 }
 0x951   : > { %v790_v38 = vmul.f32 %v1083_v35, %v782_v36 }
 0x953   : > { %v798_v39 = vadd.f32 %v1084_v37, %v790_v38 }
 0x955   : > { %v799_v40 = vpack.c.bf16 %v798_v39, %v798_v39 }
 0x957   : > { %1167 = vmatmul.mubr.msk.bf16.vlgmr.msra.gmra.mrb[16].mxu0 %vm384_vm0, %v799_v40 }
 0xa2a   : > { %v860_v50 = vpop.f32.mrb[16].mxu0 }
 0xa2b   : > { %v861_v51 = vadd.f32 %v1085_v49, %v860_v50  ;;  %v1168_v52 = vpop.f32.mrb[17].mxu0 }
 0xa2c   : > { %v863_v53 = vpop.f32.mrb[18].mxu0 }
 0xa2d   : > { %v866_v54 = vmul.f32 %v861_v51, %v861_v51  ;;  %v1169_v55 = vpop.f32.mrb[19].mxu0 }
 0xa2f   : > { %v867_v56 = vmul.f32 %v866_v54, %v861_v51 }
 0xa31   : > { %v868_v57 = vmul.f32 0.044715, %v867_v56 }
 0xa33   : > { %v869_v58 = vadd.f32 %v868_v57, %v861_v51 }
 0xa35   : > { %v870_v59 = vmul.f32 0.7978846, %v869_v58 }
 0xa37   : > { %1258 = vtanh.f32 %v870_v59 }
 0xa41   : > { %v1259_v60 = vpop.eup %1258 }
 0xa42   : > { %v872_v8 = vadd.f32 1.0, %v1259_v60 }
 0xa44   : > { %v873_v61 = vmul.f32 0.5, %v872_v8 }
 0xa46   : > { %v874_v62 = vmul.f32 %v873_v61, %v861_v51 }
 0xa48   : > { %v875_v63 = vpack.c.bf16 %v874_v62, %v874_v62 }
 0xa4a   : > { %1187 = vmatmul.mubr.bf16.vlgmr.msra.gmra.mrb[8].mxu1 %v875_v63 }
 0xb1d   : > { %v981_v2 = vpop.f32.mrb[8].mxu1 }
 0xb1e   : > { %v982_v3 = vadd.f32 %v1089_v1, %v981_v2  ;;  %v1188_v4 = vpop.f32.mrb[9].mxu1 }
 0xb1f   : > { %v984_v5 = vpop.f32.mrb[10].mxu1 }
 0xb20   : > { %v987_v6 = vadd.f32 %v982_v3, %v1509_v23  ;;  %v1189_v7 = vpop.f32.mrb[11].mxu1 }
 0xb22   : > { %988 = vst.msk [vmem:[%s377_s30] sm:$0xff] %vm384_vm0, %v987_v6 }
 0xb23   : > { %1273 = shalt.err (!%p1270_p3)
}
 0xb24   : > { %s1274_s16 = scalar_lea.hbm %s1572_s15, 128  ;;  %s1278_s13 = scalar_lea.hbm %s1626_s11, 256 }
 0xb25   : > { %p1275_p4 = scmp.ne.s32.totalorder %s1572_s15, %s1274_s16  ;;  %p1279_p9 = scmp.lt.u32.totalorder %s1572_s15, %s1626_s11 }
 0xb26   : > { %p1280_p10 = scmp.lt.u32.totalorder %s1278_s13, %s1274_s16  ;;  %p1282_p12 = scmp.lt.u32.totalorder %s1274_s16, %s1572_s15 }
 0xb27   : > { %p1276_p7 = pnand %p1275_p4, %p1428_p5 }
 0xb28   : > { %p1281_p11 = por %p1280_p10, %p1279_p9 }
 0xb29   : > { %p1277_p8 = pneg %p1276_p7 }
 0xb2a   : > { %p1283_p13 = por %p1282_p12, %p1281_p11 }
 0xb2c   : > { %p1284_p0 = pnand %p1283_p13, %p1277_p8 }
 0xb2e   : > { %1287 = shalt.err (!%p1284_p0)
}
 0xb2f   : > { %1190 = dma.vmem_to_hbm [thread:$0]  (%p1428_p5), %s1574_s12, 128, %s1572_s15, %s990_s21  }
 0xb30 PF: > { %p1196_p1 = scmp.ge.s32.totalorder %s1322_s20, 2  ;;  %s1015_s0 = sand.u32 1, %s1310_s17  }
 0xb31   : > { %s1016_s22 = scalar_lea.sflag [#allocation3], %s1015_s0 }
 0xb32   : > { %p1193_p2 = pnand %p1196_p1, %p1432_p6 }
 0xb34   : > { %1305 = dma.done.wait (!%p1193_p2), %s1016_s22, 128  }
 0xb35   : > { %1307 = vsyncadd (!%p1193_p2), %s1016_s22, 4294967168  ;;  %p21_p3 = scmp.ge.s32.totalorder %s1415_s23, 4   ;;  %s1631_s17 = smov %s1314_s18 }
 0xb36   : > { %s1632_s18 = smov %s1318_s19  ;;  %s1633_s19 = smov %s1426_s26 }
 0xb37   : > { %s1634_s20 = smov %s1415_s23  ;;  %23 = sbr.rel (!%p21_p3) target bundleno = 5 (0x5), region = 101 }
 0xb3e   :  { %1021 = vsyncpa [#allocation3], 1 }
 0xb3f   :  { %1023 = vsyncpa [#allocation3 + $0x1], 1 }

</bundles_post_ra>
